<compile_context>
chip_gen: v6e
topology: v6e:2x2x1
jax: 0.10.0
libtpu: 0.0.40
codegen_flags: <defaults>
</compile_context>

<pallas_src>
import jax
import jax.numpy as jnp
from jax.experimental import pallas as pl
from jax.experimental.pallas import tpu as pltpu


def _mlp_kernel(x_ref, w1_ref, b1_ref, w2_ref, b2_ref, w3_ref, b3_ref, out_ref):
    # ReLU after the bf16 cast (mathematically identical; halves elementwise work
    # on bf16-VPU chips). Weights arrive already in bf16; biases stay f32 and are
    # added to the f32 MXU accumulators.
    x = jnp.maximum(x_ref[...].astype(jnp.bfloat16), 0.0)

    h1 = jnp.dot(x, w1_ref[...], preferred_element_type=jnp.float32) + b1_ref[...]
    h1 = jnp.maximum(h1, 0.0)

    h2 = jnp.dot(h1.astype(jnp.bfloat16), w2_ref[...],
                 preferred_element_type=jnp.float32) + b2_ref[...]
    h2 = jnp.maximum(h2, 0.0)

    y = jnp.dot(h2.astype(jnp.bfloat16), w3_ref[...],
                preferred_element_type=jnp.float32) + b3_ref[...]
    out_ref[...] = y.astype(out_ref.dtype)


def _round_up(x, m):
    return ((x + m - 1) // m) * m


def _vmem_bytes(tb, H, out_dim, x_itemsize):
    """Rough per-step VMEM footprint for tile size tb (input stream double-buffered,
    resident bf16 weights + f32 biases at 2x buffering, body temporaries)."""
    d2, d3 = H // 8, H // 16
    xbuf = 2 * tb * H * x_itemsize                          # double-buffered x
    obuf = 2 * tb * out_dim * 4                             # double-buffered f32 out
    wbuf = 2 * 2 * (H * d2 + d2 * d3 + d3 * out_dim)        # resident bf16 weights
    bbuf = 2 * 4 * (d2 + d3 + out_dim)                      # resident f32 biases
    body = tb * (2 * H + 4 * d2 + 4 * d3 + 4 * out_dim)     # bf16 x copy + f32 h1/h2/y
    return xbuf + obuf + wbuf + bbuf + body


def _choose_batch_tile(B, target, H, out_dim, x_itemsize, vmem_budget):
    """8-aligned batch tile: as large as the target/VMEM budget allows, but never
    larger than needed for >= 2 grid steps (keeps both v7x TensorCores busy)."""
    if B <= 8:
        return B                                    # single block == full batch dim
    half = _round_up(pl.cdiv(B, 2), 8)              # <= B for all B >= 9
    tb = min(max(8, (target // 8) * 8), half)
    while tb > 8 and _vmem_bytes(tb, H, out_dim, x_itemsize) > vmem_budget:
        tb = max(8, ((tb // 2) // 8) * 8)
    return tb


def output_network_forward(inp, params, *, batch_tile=2048,
                           vmem_budget_bytes=32 * 1024 * 1024):
    """inp: (B, 1, hid_dim), f32 or bf16.  params: dict of w1,b1,w2,b2,w3,b3."""
    B, one, H = inp.shape
    assert one == 1

    # Weights are fed to the kernel in bf16 (resident across all grid steps, so no
    # per-step in-kernel casts). In production, store them in bf16 at init to make
    # this a no-op.
    w1 = params["w1"].astype(jnp.bfloat16)
    w2 = params["w2"].astype(jnp.bfloat16)
    w3 = params["w3"].astype(jnp.bfloat16)
    b1, b2, b3 = params["b1"], params["b2"], params["b3"]
    out_dim = w3.shape[1]
    d2, d3 = w1.shape[1], w2.shape[1]

    x_itemsize = jnp.dtype(inp.dtype).itemsize
    tb = _choose_batch_tile(B, batch_tile, H, out_dim, x_itemsize, vmem_budget_bytes)
    grid = (pl.cdiv(B, tb),)

    # Whole weight/bias arrays resident in VMEM (constant block index -> no re-fetch).
    resident = lambda arr: pl.BlockSpec(arr.shape, lambda i: (0, 0))

    flops = 2 * B * (H * d2 + d2 * d3 + d3 * out_dim)
    bytes_accessed = (B * H * x_itemsize + B * out_dim * 4
                      + 2 * (w1.size + w2.size + w3.size)
                      + 4 * (b1.size + b2.size + b3.size))

    needed = _vmem_bytes(tb, H, out_dim, x_itemsize)
    vmem_limit = int(min(64 * 1024 * 1024, max(32 * 1024 * 1024, (needed * 3) // 2)))

    return pl.pallas_call(
        _mlp_kernel,
        out_shape=jax.ShapeDtypeStruct((B, out_dim), jnp.float32),
        grid=grid,
        in_specs=[
            # (B, 1, H): tile the batch dim, squeeze the singleton dim, full features.
            pl.BlockSpec((tb, pl.Squeezed(), H), lambda i: (i, 0, 0)),
            resident(w1), resident(b1),
            resident(w2), resident(b2),
            resident(w3), resident(b3),
        ],
        out_specs=pl.BlockSpec((tb, out_dim), lambda i: (i, 0)),
        compiler_params=pltpu.CompilerParams(
            dimension_semantics=("parallel",),
            vmem_limit_bytes=vmem_limit),
        cost_estimate=pl.CostEstimate(
            flops=flops, transcendentals=0, bytes_accessed=bytes_accessed),
    )(inp, w1, b1, w2, b2, w3, b3)


def init_params(key, hid_dim, output_dim):
    dim1 = hid_dim
    dim2 = dim1 // 8
    dim3 = dim2 // 2
    ks = jax.random.split(key, 6)
    # weights stored (in, out); biases as (1, out) rows for TPU-friendly broadcast
    scale = lambda fan_in: 1.0 / jnp.sqrt(jnp.float32(fan_in))
    return {
        "w1": jax.random.uniform(ks[0], (dim1, dim2), jnp.float32, -1, 1) * scale(dim1),
        "b1": jax.random.uniform(ks[1], (1, dim2), jnp.float32, -1, 1) * scale(dim1),
        "w2": jax.random.uniform(ks[2], (dim2, dim3), jnp.float32, -1, 1) * scale(dim2),
        "b2": jax.random.uniform(ks[3], (1, dim3), jnp.float32, -1, 1) * scale(dim2),
        "w3": jax.random.uniform(ks[4], (dim3, output_dim), jnp.float32, -1, 1) * scale(dim3),
        "b3": jax.random.uniform(ks[5], (1, output_dim), jnp.float32, -1, 1) * scale(dim3),
    }


def reference_forward(inp, params):
    x = jnp.maximum(inp.reshape(inp.shape[0], inp.shape[-1]), 0.0)
    x = jnp.maximum(x @ params["w1"] + params["b1"], 0.0)
    x = jnp.maximum(x @ params["w2"] + params["b2"], 0.0)
    return x @ params["w3"] + params["b3"]


if __name__ == "__main__":
    key = jax.random.PRNGKey(0)
    k_inp, k_par = jax.random.split(key)

    B = 100                # not a tile multiple -> exercises the masked partial last block
    hid_dim = 256          # dim2 = 32, dim3 = 16
    output_dim = 8

    inp = jax.random.normal(k_inp, (B, 1, hid_dim), dtype=jnp.float32)
    params = init_params(k_par, hid_dim, output_dim)

    # At these shapes the tile selector picks tb=56 -> grid=(2,) with a partial
    # second block, so the demo exercises both the multi-step parallel grid and
    # the cdiv masking path; production default is batch_tile=2048.
    out = output_network_forward(inp, params)
    out = jax.block_until_ready(out)

    ref = reference_forward(inp, params)
    assert out.shape == (B, output_dim)
    # bf16 MXU operands -> relaxed tolerance against the f32 reference.
    assert jnp.allclose(out, ref, atol=5e-2, rtol=5e-2), float(jnp.max(jnp.abs(out - ref)))

    print("KERNEL_OK")
</pallas_src>

<mosaic_0001>
module attributes {stable_mosaic.version = 11 : i64} {
  func.func @_mlp_kernel(%arg0: i32, %arg1: memref<56x1x256xf32, #tpu.memory_space<vmem>>, %arg2: memref<256x32xbf16, #tpu.memory_space<vmem>>, %arg3: memref<1x32xf32, #tpu.memory_space<vmem>>, %arg4: memref<32x16xbf16, #tpu.memory_space<vmem>>, %arg5: memref<1x16xf32, #tpu.memory_space<vmem>>, %arg6: memref<16x8xbf16, #tpu.memory_space<vmem>>, %arg7: memref<1x8xf32, #tpu.memory_space<vmem>>, %arg8: memref<56x8xf32, #tpu.memory_space<vmem>>) attributes {dimension_semantics = [#tpu.dimension_semantics<parallel>], iteration_bounds = array<i64: 2>, scalar_prefetch = 0 : i64, scratch_operands = 0 : i64, tpu.core_type = #tpu.core_type<tc>, window_params = [{transform_indices = @transform_0, window_bounds = array<i64: 56, 1, 256>}, {pipeline_mode = #tpu.pipeline_mode<synchronous>, transform_indices = @transform_1, window_bounds = array<i64: 256, 32>}, {pipeline_mode = #tpu.pipeline_mode<synchronous>, transform_indices = @transform_2, window_bounds = array<i64: 1, 32>}, {pipeline_mode = #tpu.pipeline_mode<synchronous>, transform_indices = @transform_3, window_bounds = array<i64: 32, 16>}, {pipeline_mode = #tpu.pipeline_mode<synchronous>, transform_indices = @transform_4, window_bounds = array<i64: 1, 16>}, {pipeline_mode = #tpu.pipeline_mode<synchronous>, transform_indices = @transform_5, window_bounds = array<i64: 16, 8>}, {pipeline_mode = #tpu.pipeline_mode<synchronous>, transform_indices = @transform_6, window_bounds = array<i64: 1, 8>}, {transform_indices = @transform_7, window_bounds = array<i64: 56, 8>}]} {
    %c0 = arith.constant 0 : index
    %c0_0 = arith.constant 0 : index
    %c0_1 = arith.constant 0 : index
    %0 = vector.load %arg1[%c0, %c0_0, %c0_1] : memref<56x1x256xf32, #tpu.memory_space<vmem>>, vector<56x1x256xf32>
    %1 = vector.shape_cast %0 : vector<56x1x256xf32> to vector<56x256xf32>
    %2 = arith.truncf %1 : vector<56x256xf32> to vector<56x256xbf16>
    %cst = arith.constant 0.000000e+00 : bf16
    %3 = vector.broadcast %cst : bf16 to vector<56x256xbf16>
    %4 = arith.maximumf %2, %3 : vector<56x256xbf16>
    %c0_2 = arith.constant 0 : index
    %c0_3 = arith.constant 0 : index
    %5 = vector.load %arg2[%c0_2, %c0_3] : memref<256x32xbf16, #tpu.memory_space<vmem>>, vector<256x32xbf16>
    %cst_4 = arith.constant dense<0.000000e+00> : vector<56x32xf32>
    %6 = tpu.matmul %4, %5, %cst_4 {dimension_numbers = #tpu.dot_dimension_numbers<[1], [0], [0], [1], [0, 0, 1, 1], [], []>} : vector<56x256xbf16>, vector<256x32xbf16>, vector<56x32xf32> -> vector<56x32xf32>
    %c0_5 = arith.constant 0 : index
    %c0_6 = arith.constant 0 : index
    %7 = vector.load %arg3[%c0_5, %c0_6] : memref<1x32xf32, #tpu.memory_space<vmem>>, vector<1x32xf32>
    %8 = vector.broadcast %7 : vector<1x32xf32> to vector<56x32xf32>
    %9 = arith.addf %6, %8 : vector<56x32xf32>
    %cst_7 = arith.constant 0.000000e+00 : f32
    %10 = vector.broadcast %cst_7 : f32 to vector<56x32xf32>
    %11 = arith.maximumf %9, %10 : vector<56x32xf32>
    %12 = arith.truncf %11 : vector<56x32xf32> to vector<56x32xbf16>
    %c0_8 = arith.constant 0 : index
    %c0_9 = arith.constant 0 : index
    %13 = vector.load %arg4[%c0_8, %c0_9] : memref<32x16xbf16, #tpu.memory_space<vmem>>, vector<32x16xbf16>
    %cst_10 = arith.constant dense<0.000000e+00> : vector<56x16xf32>
    %14 = tpu.matmul %12, %13, %cst_10 {dimension_numbers = #tpu.dot_dimension_numbers<[1], [0], [0], [1], [0, 0, 1, 1], [], []>} : vector<56x32xbf16>, vector<32x16xbf16>, vector<56x16xf32> -> vector<56x16xf32>
    %c0_11 = arith.constant 0 : index
    %c0_12 = arith.constant 0 : index
    %15 = vector.load %arg5[%c0_11, %c0_12] : memref<1x16xf32, #tpu.memory_space<vmem>>, vector<1x16xf32>
    %16 = vector.broadcast %15 : vector<1x16xf32> to vector<56x16xf32>
    %17 = arith.addf %14, %16 : vector<56x16xf32>
    %cst_13 = arith.constant 0.000000e+00 : f32
    %18 = vector.broadcast %cst_13 : f32 to vector<56x16xf32>
    %19 = arith.maximumf %17, %18 : vector<56x16xf32>
    %20 = arith.truncf %19 : vector<56x16xf32> to vector<56x16xbf16>
    %c0_14 = arith.constant 0 : index
    %c0_15 = arith.constant 0 : index
    %21 = vector.load %arg6[%c0_14, %c0_15] : memref<16x8xbf16, #tpu.memory_space<vmem>>, vector<16x8xbf16>
    %cst_16 = arith.constant dense<0.000000e+00> : vector<56x8xf32>
    %22 = tpu.matmul %20, %21, %cst_16 {dimension_numbers = #tpu.dot_dimension_numbers<[1], [0], [0], [1], [0, 0, 1, 1], [], []>} : vector<56x16xbf16>, vector<16x8xbf16>, vector<56x8xf32> -> vector<56x8xf32>
    %c0_17 = arith.constant 0 : index
    %c0_18 = arith.constant 0 : index
    %23 = vector.load %arg7[%c0_17, %c0_18] : memref<1x8xf32, #tpu.memory_space<vmem>>, vector<1x8xf32>
    %24 = vector.broadcast %23 : vector<1x8xf32> to vector<56x8xf32>
    %25 = arith.addf %22, %24 : vector<56x8xf32>
    %c0_19 = arith.constant 0 : index
    %c0_20 = arith.constant 0 : index
    %26 = vector.load %arg8[%c0_19, %c0_20] : memref<56x8xf32, #tpu.memory_space<vmem>>, vector<56x8xf32>
    tpu.vector_store %arg8[%c0_19, %c0_20], %25 {strides = array<i32>} : memref<56x8xf32, #tpu.memory_space<vmem>>, vector<56x8xf32>,
    return
  }
  func.func @transform_0(%arg0: i32) -> (i32, i32, i32) {
    %c0_i32 = arith.constant 0 : i32
    %c0_i32_0 = arith.constant 0 : i32
    %c0_i32_1 = arith.constant 0 : i32
    return %arg0, %c0_i32, %c0_i32_0 : i32, i32, i32
  }
  func.func @transform_1(%arg0: i32) -> (i32, i32) {
    %c0_i32 = arith.constant 0 : i32
    %c0_i32_0 = arith.constant 0 : i32
    %c0_i32_1 = arith.constant 0 : i32
    return %c0_i32, %c0_i32_0 : i32, i32
  }
  func.func @transform_2(%arg0: i32) -> (i32, i32) {
    %c0_i32 = arith.constant 0 : i32
    %c0_i32_0 = arith.constant 0 : i32
    %c0_i32_1 = arith.constant 0 : i32
    return %c0_i32, %c0_i32_0 : i32, i32
  }
  func.func @transform_3(%arg0: i32) -> (i32, i32) {
    %c0_i32 = arith.constant 0 : i32
    %c0_i32_0 = arith.constant 0 : i32
    %c0_i32_1 = arith.constant 0 : i32
    return %c0_i32, %c0_i32_0 : i32, i32
  }
  func.func @transform_4(%arg0: i32) -> (i32, i32) {
    %c0_i32 = arith.constant 0 : i32
    %c0_i32_0 = arith.constant 0 : i32
    %c0_i32_1 = arith.constant 0 : i32
    return %c0_i32, %c0_i32_0 : i32, i32
  }
  func.func @transform_5(%arg0: i32) -> (i32, i32) {
    %c0_i32 = arith.constant 0 : i32
    %c0_i32_0 = arith.constant 0 : i32
    %c0_i32_1 = arith.constant 0 : i32
    return %c0_i32, %c0_i32_0 : i32, i32
  }
  func.func @transform_6(%arg0: i32) -> (i32, i32) {
    %c0_i32 = arith.constant 0 : i32
    %c0_i32_0 = arith.constant 0 : i32
    %c0_i32_1 = arith.constant 0 : i32
    return %c0_i32, %c0_i32_0 : i32, i32
  }
  func.func @transform_7(%arg0: i32) -> (i32, i32) {
    %c0_i32 = arith.constant 0 : i32
    %c0_i32_0 = arith.constant 0 : i32
    return %arg0, %c0_i32 : i32, i32
  }
}

</mosaic_0001>

<bundles_post_ra>
// kernel: tpu_custom_call.1
= control target key start
LH: loop header
LB: loop body
LE: loop exit
PB: predicated region body
PF: predicated region fallthrough
CT: control target
= control target key end

     0   :  { %12 = vsyncpa [#allocation3], 0  ;;  %s3701_s0 = inlined_call_operand.hbm [shape: f32[100,1,256], index: 0, kind: input, shape index: {}]   ;;  %s3702_s1 = inlined_call_operand.vmem [shape: bf16[256,32], index: 1, kind: input, shape index: {}]   ;;  %s3703_s2 = inlined_call_operand.vmem [shape: f32[1,32], index: 2, kind: input, shape index: {}]   ;;  %s3704_s3 = inlined_call_operand.vmem [shape: bf16[32,16], index: 3, kind: input, shape index: {}]   ;;  %s3705_s4 = inlined_call_operand.vmem [shape: f32[1,16], index: 4, kind: input, shape index: {}]   ;;  %s3706_s5 = inlined_call_operand.vmem [shape: bf16[16,8], index: 5, kind: input, shape index: {}]   ;;  %s3707_s6 = inlined_call_operand.vmem [shape: f32[1,8], index: 6, kind: input, shape index: {}]   ;;  %s3708_s7 = inlined_call_operand.vmem [shape: f32[100,8], index: 7, kind: output, shape index: {}]  }
   0x1   :  { %14 = vsyncpa [#allocation3 + $0x1], 0  ;;  %s2754_s24 = smov 0   ;;  %s2756_s25 = smov 0  }
   0x2   :  { %s2758_s26 = smov 0   ;;  %s2760_s27 = smov 0  }
   0x3 LB: > { %s2773_s28 = sadd.s32 4294967295, %s2676_s27   ;;  %s2776_s29 = sadd.s32 1, %s2676_s27   ;;  %s2676_s27 = sphi %s2760_s27, %s3723_s27   ;;  %s2672_s26 = sphi %s2758_s26, %s3722_s26   ;;  %s2668_s25 = sphi %s2756_s25, %s3721_s25   ;;  %s2664_s24 = sphi %s2754_s24, %s3720_s24  }
   0x4   : > { %s24_s30 = ssub.s32 %s2676_s27, %s2776_s29  ;;  %s27_s8 = sadd.s32 1, %s2672_s26 }
   0x5   : > { %p25_p0 = scmp.eq.s32.totalorder %s24_s30, 0  ;;  %p34_p1 = scmp.ne.s32.totalorder %s2672_s26, %s2668_s25 }
   0x6   : > { %p35_p2 = scmp.eq.s32.totalorder %s2676_s27, 0  ;;  %p40_p3 = scmp.ne.s32.totalorder %s2668_s25, %s2664_s24 }
   0x7   : > { %s2786_s9 = scalar_select %p25_p0, %s2672_s26, %s27_s8  }
   0x8   : > { %p36_p4 = por %p35_p2, %p34_p1  ;;  %p41_p5 = scmp.eq.s32.totalorder %s2773_s28, 0 }
   0x9   : > { %p190_p6 = scmp.eq.s32.totalorder %s2773_s28, 1  ;;  %p2328_p9 = scmp.ge.s32.totalorder %s2676_s27, 2 }
   0xa   : > { %p2790_p7 = por %p41_p5, %p40_p3 }
   0xb   : > { %p2794_p8 = por %p190_p6, %p34_p1  ;;  %230 = sbr.rel (%p2328_p9) target bundleno = 50 (0x32), region = 40 }
  0x10   : > { %233 = sbr.rel (!%p36_p4) target bundleno = 50 (0x32), region = 44  ;;  %s234_s12 = sand.u32 (%p36_p4), 1, %s2672_s26  }
  0x11   : > { %s239_s13 = smul.u32 (%p36_p4), 56, %s2676_s27  ;;  %s2804_s18 = scalar_lea.sflag (%p36_p4), [#allocation3], %s234_s12 }
  0x12   : > { %s2457_s14 = smul.u32 (%p36_p4), 112, %s234_s12 }
  0x13   : > { %s240_s15 = ssub.s32 (%p36_p4), 100, %s239_s13 }
  0x14   : > { %p241_p10 = scmp.lt.s32.totalorder (%p36_p4), %s240_s15, 56  ;;  %s238_s19 = scalar_lea.vmem (%p36_p4), [#allocation2], %s2457_s14 }
  0x16   : > { %s3725_s15 = smov (!%p241_p10, %s240_s15), 56 }
  0x17   : > { %s2801_s16 = sshll.u32 %s3725_s15, 5 }
  0x18   : > { %s246_s17 = ssub.s32 1792, %s2801_s16 }
  0x19   : > { %247 = vsyncadd %s2804_s18, %s246_s17  ;;  %p2331_p11 = scmp.ne.s32.totalorder %s2801_s16, 0  ;;  %s2383_s20 = smul.u32 1792, %s2676_s27 }
  0x1a   : > { %s253_s21 = sshll.u32 %s238_s19, 4  ;;  %s2588_s13 = scalar_lea.hbm %s3701_s0, 3200  ;;  %s2814_s21 = int_to_ptr.vmem [resolvable:$true] %s253_s21 }
  0x1b   : > { %s2812_s24 = scalar_lea.hbm %s3701_s0, %s2383_s20 }
  0x1c   : > { %s2584_s30 = scalar_lea.hbm %s2812_s24, %s2801_s16  ;;  %p2589_p1 = scmp.lt.s32.totalorder %s2812_s24, %s3701_s0 }
  0x1d   : > { %p2585_p12 = scmp.ne.s32.totalorder %s2812_s24, %s2584_s30  ;;  %p2590_p2 = scmp.lt.s32.totalorder %s2588_s13, %s2584_s30 }
  0x1f   : > { %p2586_p13 = pnand %p2585_p12, %p2331_p11  ;;  %p2591_p3 = por %p2590_p2, %p2589_p1 }
  0x21   : > { %p2587_p0 = pneg %p2586_p13 }
  0x23   : > { %p2592_p4 = pnand %p2591_p3, %p2587_p0 }
  0x25   : > { %2595 = shalt.err (!%p2592_p4)
}
  0x26   : > { %s2596_s17 = scalar_lea.vmem %s2814_s21, %s2801_s16  ;;  %s2710_s19 = smov [#allocation2]  }
  0x27   : > { %p2597_p5 = scmp.ne.s32.totalorder %s2814_s21, %s2596_s17  ;;  %s2600_s20 = sshll.u32 %s2710_s19, 4  ;;  %s2601_s20 = int_to_ptr.vmem [resolvable:$false] %s2600_s20 }
  0x28   : > { %s2602_s22 = scalar_lea.vmem %s2601_s20, 3584  ;;  %p2603_p10 = scmp.lt.s32.totalorder %s2814_s21, %s2601_s20 }
  0x29   : > { %p2598_p6 = pnand %p2597_p5, %p2331_p11  ;;  %p2604_p12 = scmp.lt.s32.totalorder %s2602_s22, %s2596_s17 }
  0x2b   : > { %p2599_p9 = pneg %p2598_p6  ;;  %p2605_p13 = por %p2604_p12, %p2603_p10 }
  0x2d   : > { %p2606_p1 = pnand %p2605_p13, %p2599_p9 }
  0x2f   : > { %2609 = shalt.err (!%p2606_p1)
}
  0x30   : > { %s2711_s23 = smov 32   ;;  %s2712_s30 = smov 2  }
  0x31   : > { %259 = dma.hbm_to_vmem [thread:$0]  (%p2331_p11), %s2812_s24, %s2801_s16, %s2814_s21, %s2804_s18, %s2711_s23, %s2711_s23, %s2712_s30  }
  0x32 PF: > { %p2336_p0 = scmp.ge.s32.totalorder %s2676_s27, 1  ;;  %p261_p2 = scmp.lt.s32.totalorder %s2676_s27, 3 }
  0x34   : > { %p262_p3 = pnand %p2336_p0, %p261_p2 }
  0x35   : > { %s2843_s8 = sand.u32 (!%p262_p3), 1, %s2668_s25  }
  0x36   : > { %265 = sbr.rel (%p262_p3) target bundleno = 900 (0x384), region = 48  ;;  %s268_s13 = scalar_lea.sflag (!%p262_p3), [#allocation3], %s2843_s8 }
  0x37   : > { %s2458_s12 = smul.u32 (!%p262_p3), 112, %s2843_s8 }
  0x39   : > { %s2847_s14 = scalar_lea.vmem (!%p262_p3), [#allocation2], %s2458_s12 }
  0x3b   : > { %2659 = dma.done.wait (%p2790_p7), %s268_s13, 1792  }
  0x3c   : > { %2661 = vsyncadd (%p2790_p7), %s268_s13, 4294965504  ;;  %v2561_v0 = vld [vmem:[%s3702_s1 + $0x78] sm:$0xff]   ;;  %v2563_v2 = vld [vmem:[%s3702_s1 + $0x70] sm:$0xff]   ;;  %v425_v5 = vlaneseq  ;;  %vm1473_vm0 = vcmask 1041409   ;;  %vm1476_vm1 = vcmask 1042434   ;;  %vm1479_vm2 = vcmask 1043459  }
  0x3d   : > { %v2562_v1 = vld [vmem:[%s3702_s1 + $0x38] sm:$0xff]   ;;  %2384 = vmatprep.subr.bf16.mxu0 %v2561_v0  ;;  %v2564_v3 = vld [vmem:[%s3702_s1 + $0x30] sm:$0xff]   ;;  %v2565_v4 = vld [vmem:[%s3702_s1 + $0x68] sm:$0xff]   ;;  %vm1482_vm3 = vcmask 1044484   ;;  %vm1485_vm4 = vcmask 1045509   ;;  %vm1488_vm5 = vcmask 1046534  }
  0x3e   : > { %2385 = vmatpush3.bf16.msra.mxu0 %v2562_v1  ;;  %v2566_v6 = vld [vmem:[%s3702_s1 + $0x28] sm:$0xff]   ;;  %v2567_v7 = vld [vmem:[%s3702_s1 + $0x60] sm:$0xff]   ;;  %v426_v8 = vshrl.u32 %v425_v5, 7  ;;  %v2569_v10 = vld [vmem:[%s3702_s1 + $0x58] sm:$0xff]   ;;  %vm1491_vm6 = vcmask 1047559   ;;  %vm1885_vm7 = vcmask 261120  }
  0x3f   : > { %2386 = vmatprep.subr.bf16.mxu0 %v2563_v2  ;;  %v2568_v9 = vld [vmem:[%s3702_s1 + $0x20] sm:$0xff]   ;;  %v2570_v13 = vld [vmem:[%s3702_s1 + $0x18] sm:$0xff]   ;;  %v2571_v14 = vld [vmem:[%s3702_s1 + $0x50] sm:$0xff]   ;;  %vm1988_vm8 = vcmask 130048   ;;  %s2459_s23 = smul.u32 56, %s2843_s8  ;;  %vm2065_vm9 = vcmask 64512  }
  0x40   : > { %v2880_v11 = vsub.s32 0, %v426_v8  ;;  %v2882_v12 = vsub.s32 1, %v426_v8  ;;  %v313_v15 = vld [vmem:[%s2847_s14] sm:$0x3]  ;;  %v314_v16 = vld [vmem:[%s2847_s14 + $0x2] sm:$0x3] }
  0x41   : > { %v315_v17 = vld [vmem:[%s2847_s14 + $0x4] sm:$0x3]  ;;  %v316_v19 = vld [vmem:[%s2847_s14 + $0x6] sm:$0x3]  ;;  %v317_v20 = vld [vmem:[%s2847_s14 + $0x8] sm:$0x3] }
  0x42   : > { %2387 = vmatpush3.bf16.msra.mxu0 %v2564_v3  ;;  %v2572_v18 = vld [vmem:[%s3702_s1 + $0x10] sm:$0xff]   ;;  %v318_v21 = vld [vmem:[%s2847_s14 + $0xa] sm:$0x3]  ;;  %v2900_v22 = vrot.slane %v313_v15, %v2880_v11  ;;  %v2903_v23 = vrot.slane %v313_v15, %v2882_v12  ;;  %v2906_v24 = vrot.slane %v314_v16, %v2880_v11  ;;  %v2909_v25 = vrot.slane %v314_v16, %v2882_v12  ;;  %v319_v26 = vld [vmem:[%s2847_s14 + $0xc] sm:$0x3]  ;;  %s3626_s13 = scalar_lea.vmem [#allocation4], %s2459_s23  }
  0x43   : > { %2388 = vmatprep.subr.bf16.mxu0 %v2565_v4  ;;  %v320_v27 = vld [vmem:[%s2847_s14 + $0xe] sm:$0x3]  ;;  %v321_v28 = vld [vmem:[%s2847_s14 + $0x10] sm:$0x3]  ;;  %v2915_v29 = vrot.slane %v315_v17, %v2880_v11  ;;  %v2918_v30 = vrot.slane %v315_v17, %v2882_v12  ;;  %v2921_v31 = vrot.slane %v316_v19, %v2880_v11  ;;  %v2924_v32 = vrot.slane %v316_v19, %v2882_v12  ;;  %v322_v33 = vld [vmem:[%s2847_s14 + $0x12] sm:$0x3] }
  0x44   : > { %v323_v34 = vld [vmem:[%s2847_s14 + $0x14] sm:$0x3]  ;;  %v324_v35 = vld [vmem:[%s2847_s14 + $0x16] sm:$0x3]  ;;  %v2930_v36 = vrot.slane %v317_v20, %v2880_v11  ;;  %v2933_v37 = vrot.slane %v317_v20, %v2882_v12  ;;  %v2936_v38 = vrot.slane %v318_v21, %v2880_v11  ;;  %v2939_v39 = vrot.slane %v318_v21, %v2882_v12  ;;  %v2573_v40 = vld [vmem:[%s3702_s1 + $0x48] sm:$0xff]   ;;  %s2080_s8 = smul.u32 (%p2794_p8), 7, %s2773_s28 }
  0x45   : > { %v325_v41 = vld [vmem:[%s2847_s14 + $0x18] sm:$0x3]  ;;  %v326_v42 = vld [vmem:[%s2847_s14 + $0x1a] sm:$0x3]  ;;  %v2947_v43 = vrot.slane %v319_v26, %v2880_v11  ;;  %v2950_v44 = vrot.slane %v319_v26, %v2882_v12  ;;  %v2953_v45 = vrot.slane %v320_v27, %v2880_v11  ;;  %v2956_v46 = vrot.slane %v320_v27, %v2882_v12  ;;  %v327_v47 = vld [vmem:[%s2847_s14 + $0x1c] sm:$0x3] }
  0x46   : > { %2389 = vmatpush3.bf16.msra.mxu0 %v2566_v6  ;;  %v328_v48 = vld [vmem:[%s2847_s14 + $0x1e] sm:$0x3]  ;;  %v2961_v49 = vrot.slane %v321_v28, %v2880_v11  ;;  %v2964_v50 = vrot.slane %v321_v28, %v2882_v12  ;;  %v2967_v51 = vrot.slane %v322_v33, %v2880_v11  ;;  %v2970_v52 = vrot.slane %v322_v33, %v2882_v12  ;;  %v2575_v62 = vld [vmem:[%s3702_s1 + $0x40] sm:$0xff]   ;;  %s2382_s16 = smul.u32 (%p2794_p8), 56, %s2773_s28  ;;  %s2081_s18 = ssub.s32 (%p2794_p8), 13, %s2080_s8 }
  0x47   : > { %2390 = vmatprep.subr.bf16.mxu0 %v2567_v7  ;;  %v2973_v53 = vrot.slane %v323_v34, %v2880_v11  ;;  %v2976_v54 = vrot.slane %v323_v34, %v2882_v12  ;;  %v2979_v55 = vrot.slane %v324_v35, %v2880_v11  ;;  %v2982_v56 = vrot.slane %v324_v35, %v2882_v12  ;;  %v2574_v57 = vld [vmem:[%s3702_s1 + $0x8] sm:$0xff]   ;;  %p2082_p7 = scmp.lt.s32.totalorder (%p2794_p8), %s2081_s18, 7 }
  0x48   : > { %v2988_v58 = vrot.slane %v325_v41, %v2880_v11  ;;  %v2991_v59 = vrot.slane %v325_v41, %v2882_v12  ;;  %v2994_v60 = vrot.slane %v326_v42, %v2880_v11  ;;  %v536_v61 = vrot.slane %v326_v42, %v2882_v12  ;;  %s3649_s21 = scalar_lea.vmem (%p2794_p8), %s3708_s7, %s2382_s16  }
  0x49   : > { %v3001_v63 = vrot.slane %v327_v47, %v2880_v11  ;;  %v544_v0 = vrot.slane %v327_v47, %v2882_v12  ;;  %v3005_v1 = vrot.slane %v328_v48, %v2880_v11  ;;  %v552_v2 = vrot.slane %v328_v48, %v2882_v12 }
  0x4a   : > { %2391 = vmatpush3.bf16.msra.mxu0 %v2568_v9  ;;  %v985_v3 = vpack.c.bf16 %v2900_v22, %v2900_v22  ;;  %v986_v4 = vpack.c.bf16 %v2903_v23, %v2903_v23  ;;  %v987_v5 = vpack.c.bf16 %v2906_v24, %v2906_v24  ;;  %v988_v6 = vpack.c.bf16 %v2909_v25, %v2909_v25 }
  0x4b   : > { %2392 = vmatprep.subr.bf16.mxu0 %v2569_v10  ;;  %v989_v7 = vpack.c.bf16 %v2915_v29, %v2915_v29  ;;  %v990_v8 = vpack.c.bf16 %v2918_v30, %v2918_v30  ;;  %v991_v9 = vpack.c.bf16 %v2921_v31, %v2921_v31  ;;  %v992_v10 = vpack.c.bf16 %v2924_v32, %v2924_v32 }
  0x4c   : > { %v994_v15 = vpack.c.bf16 %v2933_v37, %v2933_v37  ;;  %v995_v16 = vpack.c.bf16 %v2936_v38, %v2936_v38  ;;  %v996_v17 = vpack.c.bf16 %v2939_v39, %v2939_v39  ;;  %v998_v19 = vpack.c.bf16 %v2950_v44, %v2950_v44 }
  0x4d   : > { %v999_v20 = vpack.c.bf16 %v2953_v45, %v2953_v45  ;;  %v1000_v21 = vpack.c.bf16 %v2956_v46, %v2956_v46  ;;  %v1001_v23 = vpack.c.bf16 %v2961_v49, %v2961_v49  ;;  %v1002_v25 = vpack.c.bf16 %v2964_v50, %v2964_v50 }
  0x4e   : > { %2393 = vmatpush3.bf16.msra.mxu0 %v2570_v13  ;;  %v2576_v13 = vld [vmem:[%s3702_s1] sm:$0xff]   ;;  %v1003_v26 = vpack.c.bf16 %v2967_v51, %v2967_v51  ;;  %v1004_v27 = vpack.c.bf16 %v2970_v52, %v2970_v52  ;;  %v1006_v30 = vpack.c.bf16 %v2976_v54, %v2976_v54  ;;  %v1008_v33 = vpack.c.bf16 %v2982_v56, %v2982_v56 }
  0x4f   : > { %2394 = vmatprep.subr.bf16.mxu0 %v2571_v14  ;;  %v993_v14 = vpack.c.bf16 %v2930_v36, %v2930_v36  ;;  %v1010_v35 = vpack.c.bf16 %v2991_v59, %v2991_v59  ;;  %v1012_v39 = vpack.c.bf16 %v536_v61, %v536_v61  ;;  %v1014_v41 = vpack.c.bf16 %v544_v0, %v544_v0 }
  0x50   : > { %v1016_v44 = vpack.c.bf16 %v552_v2, %v552_v2  ;;  %v2713_v46 = vmov 0   ;;  %v3712_v45 = vpack.c.bf16 %v2979_v55, %v2979_v55  ;;  %v3714_v51 = vpack.c.bf16 %v2994_v60, %v2994_v60 }
  0x51   : > { %v1098_v47 = vmax.bf16 %v2713_v46, %v986_v4  ;;  %v1100_v48 = vmax.bf16 %v2713_v46, %v988_v6  ;;  %v1102_v50 = vmax.bf16 %v2713_v46, %v990_v8  ;;  %v1104_v52 = vmax.bf16 %v2713_v46, %v992_v10 }
  0x52   : > { %2395 = vmatpush3.bf16.msra.mxu0 %v2572_v18  ;;  %v997_v18 = vpack.c.bf16 %v2947_v43, %v2947_v43  ;;  %v1106_v54 = vmax.bf16 %v2713_v46, %v994_v15  ;;  %v1108_v56 = vmax.bf16 %v2713_v46, %v996_v17  ;;  %v1112_v59 = vmax.bf16 %v2713_v46, %v1000_v21 }
  0x53   : > { %2396 = vmatprep.subr.bf16.mxu0 %v2573_v40  ;;  %v1114_v61 = vmax.bf16 %v2713_v46, %v1002_v25  ;;  %v1118_v0 = vmax.bf16 %v2713_v46, %v1006_v30  ;;  %v1120_v2 = vmax.bf16 %v2713_v46, %v1008_v33  ;;  %v1122_v4 = vmax.bf16 %v2713_v46, %v1010_v35 }
  0x54   : > { %v1124_v6 = vmax.bf16 %v2713_v46, %v1012_v39  ;;  %v1126_v8 = vmax.bf16 %v2713_v46, %v1014_v41  ;;  %v1128_v10 = vmax.bf16 %v2713_v46, %v1016_v44  ;;  %v1363_v15 = vunpack.c.l.b16 %v1100_v48 }
  0x55   : > { %v1365_v17 = vunpack.c.l.b16 %v1102_v50  ;;  %v1369_v21 = vunpack.c.l.b16 %v1106_v54  ;;  %v1371_v25 = vunpack.c.l.b16 %v1108_v56  ;;  %v1375_v30 = vunpack.c.l.b16 %v1112_v59 }
  0x56   : > { %2397 = vmatpush3.bf16.msra.mxu0 %v2574_v57  ;;  %v1110_v57 = vmax.bf16 %v2713_v46, %v998_v19  ;;  %v1367_v19 = vunpack.c.l.b16 %v1104_v52  ;;  %v1377_v33 = vunpack.c.l.b16 %v1114_v61  ;;  %v1381_v35 = vunpack.c.l.b16 %v1118_v0 }
  0x57   : > { %2398 = vmatprep.subr.bf16.mxu0 %v2575_v62  ;;  %v1116_v62 = vmax.bf16 %v2713_v46, %v1004_v27  ;;  %v1383_v40 = vunpack.c.l.b16 %v1120_v2  ;;  %v1385_v39 = vunpack.c.l.b16 %v1122_v4  ;;  %v1387_v37 = vunpack.c.l.b16 %v1124_v6 }
  0x58   : > { %v1373_v27 = vunpack.c.l.b16 %v1110_v57  ;;  %v1389_v41 = vunpack.c.l.b16 %v1126_v8  ;;  %v1391_v34 = vunpack.c.l.b16 %v1128_v10  ;;  %v1493_v44 = vrot.slane %v1363_v15, 7 }
  0x59   : > { %v1379_v42 = vunpack.c.l.b16 %v1116_v62  ;;  %v1495_v32 = vrot.slane %v1365_v17, 6  ;;  %v1499_v48 = vrot.slane %v1369_v21, 4  ;;  %v1501_v50 = vrot.slane %v1371_v25, 3 }
  0x5a   : > { %2399 = vmatpush3.bf16.msra.mxu0 %v2576_v13  ;;  %v1361_v13 = vunpack.c.l.b16 %v1098_v47  ;;  %v1497_v47 = vrot.slane %v1367_v19, 5  ;;  %v1503_v52 = vrot.slane %v1373_v27, 2  ;;  %v1505_v28 = vrot.slane %v1375_v30, 1 }
  0x5b   : > { %v1521_v54 = vrot.slane %v1379_v42, 7  ;;  %v1523_v57 = vrot.slane %v1381_v35, 6  ;;  %v1525_v59 = vrot.slane %v1383_v40, 5  ;;  %v1527_v61 = vrot.slane %v1385_v39, 4 }
  0x5c   : > { %v1494_v56 = vsel %vm1473_vm0, %v1493_v44, %v1361_v13  ;;  %v1529_v2 = vrot.slane %v1387_v37, 3  ;;  %v1531_v4 = vrot.slane %v1389_v41, 2  ;;  %v1533_v10 = vrot.slane %v1391_v34, 1 }
  0x5d   : > { %v1496_v62 = vsel %vm1476_vm1, %v1495_v32, %v1494_v56  ;;  %v1522_v0 = vsel %vm1473_vm0, %v1521_v54, %v1377_v33  ;;  %v1097_v42 = vmax.bf16 %v2713_v46, %v985_v3  ;;  %v1099_v32 = vmax.bf16 %v2713_v46, %v987_v5 }
  0x5e   : > { %v1498_v6 = vsel %vm1479_vm2, %v1497_v47, %v1496_v62  ;;  %v1524_v8 = vsel %vm1476_vm1, %v1523_v57, %v1522_v0  ;;  %v1101_v37 = vmax.bf16 %v2713_v46, %v989_v7  ;;  %v1103_v3 = vmax.bf16 %v2713_v46, %v991_v9 }
  0x5f   : > { %v1500_v13 = vsel %vm1482_vm3, %v1499_v48, %v1498_v6  ;;  %v1526_v40 = vsel %vm1479_vm2, %v1525_v59, %v1524_v8  ;;  %v1105_v24 = vmax.bf16 %v2713_v46, %v993_v14  ;;  %v1107_v7 = vmax.bf16 %v2713_v46, %v995_v16  ;;  %v3167_v59 = vld [vmem:[%s2847_s14 + $0x22] sm:$0x3] }
  0x60   : > { %v1502_v34 = vsel %vm1485_vm4, %v1501_v50, %v1500_v13  ;;  %v1528_v22 = vsel %vm1482_vm3, %v1527_v61, %v1526_v40  ;;  %v1109_v31 = vmax.bf16 %v2713_v46, %v997_v18  ;;  %v1111_v14 = vmax.bf16 %v2713_v46, %v999_v20  ;;  %v3164_v50 = vld [vmem:[%s2847_s14 + $0x20] sm:$0x3]  ;;  %v3174_v13 = vld [vmem:[%s2847_s14 + $0x26] sm:$0x3] }
  0x61   : > { %v1504_v5 = vsel %vm1488_vm5, %v1503_v52, %v1502_v34  ;;  %v1530_v29 = vsel %vm1485_vm4, %v1529_v2, %v1528_v22  ;;  %v1113_v38 = vmax.bf16 %v2713_v46, %v1001_v23  ;;  %v1115_v43 = vmax.bf16 %v2713_v46, %v1003_v26  ;;  %v3178_v22 = vld [vmem:[%s2847_s14 + $0x28] sm:$0x3] }
  0x62   : > { %v1506_v9 = vsel %vm1491_vm6, %v1505_v28, %v1504_v5  ;;  %v1532_v36 = vsel %vm1488_vm5, %v1531_v4, %v1530_v29  ;;  %v3711_v18 = vpack.c.bf16 %v2973_v53, %v2973_v53  ;;  %v1119_v20 = vmax.bf16 %v2713_v46, %v3712_v45  ;;  %v3170_v4 = vld [vmem:[%s2847_s14 + $0x24] sm:$0x3]  ;;  %v3183_v29 = vld [vmem:[%s2847_s14 + $0x2a] sm:$0x3]  ;;  %v3205_v45 = vld [vmem:[%s2847_s14 + $0x32] sm:$0x3] }
  0x63   : > { %v1534_v16 = vsel %vm1491_vm6, %v1533_v10, %v1532_v36  ;;  %v3713_v23 = vpack.c.bf16 %v2988_v58, %v2988_v58  ;;  %v1123_v26 = vmax.bf16 %v2713_v46, %v3714_v51  ;;  %v3715_v53 = vpack.c.bf16 %v3001_v63, %v3001_v63 }
  0x64   : > { %v1117_v28 = vmax.bf16 %v2713_v46, %v3711_v18  ;;  %v1676_v49 = vpack.c.b16 %v1534_v16, %v1506_v9  ;;  %v3716_v55 = vpack.c.bf16 %v3005_v1, %v3005_v1  ;;  %v1360_v21 = vunpack.c.l.b16 %v1097_v42 }
  0x65   : > { %v1121_v15 = vmax.bf16 %v2713_v46, %v3713_v23  ;;  %v1125_v17 = vmax.bf16 %v2713_v46, %v3715_v53  ;;  %v1362_v58 = vunpack.c.l.b16 %v1099_v32  ;;  %v1364_v25 = vunpack.c.l.b16 %v1101_v37  ;;  %v3220_v53 = vld [vmem:[%s2847_s14 + $0x38] sm:$0x3] }
  0x66   : > { %v1127_v19 = vmax.bf16 %v2713_v46, %v3716_v55  ;;  %1819 = vmatprep.mubr.bf16.mxu0 %v1676_v49  ;;  %v1366_v27 = vunpack.c.l.b16 %v1103_v3  ;;  %v1368_v30 = vunpack.c.l.b16 %v1105_v24  ;;  %v1370_v60 = vunpack.c.l.b16 %v1107_v7  ;;  %v3186_v7 = vld [vmem:[%s2847_s14 + $0x2c] sm:$0x3]  ;;  %v3211_v49 = vld [vmem:[%s2847_s14 + $0x36] sm:$0x3]  ;;  %v3226_v55 = vld [vmem:[%s2847_s14 + $0x3c] sm:$0x3] }
  0x67   : > { %v1372_v33 = vunpack.c.l.b16 %v1109_v31  ;;  %v1374_v35 = vunpack.c.l.b16 %v1111_v14  ;;  %v1376_v39 = vunpack.c.l.b16 %v1113_v38  ;;  %v1378_v63 = vunpack.c.l.b16 %v1115_v43  ;;  %v3193_v14 = vld [vmem:[%s2847_s14 + $0x2e] sm:$0x3]  ;;  %v3196_v38 = vld [vmem:[%s2847_s14 + $0x30] sm:$0x3] }
  0x68   : > { %v1380_v41 = vunpack.c.l.b16 %v1117_v28  ;;  %v1382_v44 = vunpack.c.l.b16 %v1119_v20  ;;  %v1384_v47 = vunpack.c.l.b16 %v1121_v15  ;;  %v1386_v1 = vunpack.c.l.b16 %v1123_v26  ;;  %v3208_v20 = vld [vmem:[%s2847_s14 + $0x34] sm:$0x3] }
  0x69   : > { %v1388_v48 = vunpack.c.l.b16 %v1125_v17  ;;  %v1390_v52 = vunpack.c.l.b16 %v1127_v19  ;;  %v1472_v54 = vrot.slane %v1362_v58, 7  ;;  %v1475_v56 = vrot.slane %v1364_v25, 6  ;;  %v3223_v17 = vld [vmem:[%s2847_s14 + $0x3a] sm:$0x3] }
  0x6a   : > { %v1478_v57 = vrot.slane %v1366_v27, 5  ;;  %v1481_v61 = vrot.slane %v1368_v30, 4  ;;  %v1484_v62 = vrot.slane %v1370_v60, 3  ;;  %v1487_v0 = vrot.slane %v1372_v33, 2  ;;  %v3235_v27 = vld [vmem:[%s2847_s14 + $0x3e] sm:$0x3] }
  0x6b   : > { %v1490_v2 = vrot.slane %v1374_v35, 1  ;;  %v1474_v6 = vsel %vm1473_vm0, %v1472_v54, %v1360_v21  ;;  %v1507_v8 = vrot.slane %v1378_v63, 7  ;;  %v1509_v10 = vrot.slane %v1380_v41, 6 }
  0x6c   : > { %v1511_v42 = vrot.slane %v1382_v44, 5  ;;  %v1477_v40 = vsel %vm1476_vm1, %v1475_v56, %v1474_v6  ;;  %v1513_v32 = vrot.slane %v1384_v47, 4  ;;  %v1515_v37 = vrot.slane %v1386_v1, 3 }
  0x6d   : > { %v1517_v34 = vrot.slane %v1388_v48, 2  ;;  %v1480_v3 = vsel %vm1479_vm2, %v1478_v57, %v1477_v40  ;;  %v1508_v24 = vsel %vm1473_vm0, %v1507_v8, %v1376_v39  ;;  %v1519_v5 = vrot.slane %v1390_v52, 1 }
  0x6e   : > { %v560_v31 = vrot.slane %v3164_v50, %v2882_v12  ;;  %v1483_v9 = vsel %vm1482_vm3, %v1481_v61, %v1480_v3  ;;  %v1510_v36 = vsel %vm1476_vm1, %v1509_v10, %v1508_v24  ;;  %v568_v16 = vrot.slane %v3167_v59, %v2882_v12 }
  0x6f   : > { %v576_v43 = vrot.slane %v3170_v4, %v2882_v12  ;;  %v1486_v18 = vsel %vm1485_vm4, %v1484_v62, %v1483_v9  ;;  %v1512_v28 = vsel %vm1479_vm2, %v1511_v42, %v1510_v36  ;;  %v584_v23 = vrot.slane %v3174_v13, %v2882_v12 }
  0x70   : > { %v592_v15 = vrot.slane %v3178_v22, %v2882_v12  ;;  %v1489_v51 = vsel %vm1488_vm5, %v1487_v0, %v1486_v18  ;;  %v1514_v26 = vsel %vm1482_vm3, %v1513_v32, %v1512_v28  ;;  %v600_v19 = vrot.slane %v3183_v29, %v2882_v12 }
  0x71   : > { %v608_v21 = vrot.slane %v3186_v7, %v2882_v12  ;;  %v1492_v58 = vsel %vm1491_vm6, %v1490_v2, %v1489_v51  ;;  %v1516_v25 = vsel %vm1485_vm4, %v1515_v37, %v1514_v26  ;;  %v616_v30 = vrot.slane %v3193_v14, %v2882_v12 }
  0x72   : > { %v624_v60 = vrot.slane %v3196_v38, %v2882_v12  ;;  %v1518_v33 = vsel %vm1488_vm5, %v1517_v34, %v1516_v25  ;;  %v632_v35 = vrot.slane %v3205_v45, %v2882_v12  ;;  %v640_v39 = vrot.slane %v3208_v20, %v2882_v12 }
  0x73   : > { %v648_v63 = vrot.slane %v3211_v49, %v2882_v12  ;;  %v1520_v41 = vsel %vm1491_vm6, %v1519_v5, %v1518_v33  ;;  %v656_v44 = vrot.slane %v3220_v53, %v2882_v12  ;;  %v664_v47 = vrot.slane %v3223_v17, %v2882_v12 }
  0x74   : > { %v672_v1 = vrot.slane %v3226_v55, %v2882_v12  ;;  %v1675_v48 = vpack.c.b16 %v1520_v41, %v1492_v58  ;;  %v680_v52 = vrot.slane %v3235_v27, %v2882_v12  ;;  %v1018_v54 = vpack.c.bf16 %v560_v31, %v560_v31 }
  0x75   : > { %v1020_v56 = vpack.c.bf16 %v568_v16, %v568_v16  ;;  %v1022_v57 = vpack.c.bf16 %v576_v43, %v576_v43  ;;  %v1024_v61 = vpack.c.bf16 %v584_v23, %v584_v23  ;;  %v1026_v62 = vpack.c.bf16 %v592_v15, %v592_v15 }
  0x76   : > { %v1028_v0 = vpack.c.bf16 %v600_v19, %v600_v19  ;;  %1820 = vmatmul.mubr.bf16.vlgmr.msra.gmra.mxu0 %v1675_v48  ;;  %v1030_v2 = vpack.c.bf16 %v608_v21, %v608_v21  ;;  %v1032_v6 = vpack.c.bf16 %v616_v30, %v616_v30  ;;  %v1034_v8 = vpack.c.bf16 %v624_v60, %v624_v60 }
  0x77   : > { %v1036_v10 = vpack.c.bf16 %v632_v35, %v632_v35  ;;  %v1038_v42 = vpack.c.bf16 %v640_v39, %v640_v39  ;;  %v1040_v40 = vpack.c.bf16 %v648_v63, %v648_v63  ;;  %v1042_v32 = vpack.c.bf16 %v656_v44, %v656_v44 }
  0x78   : > { %v1044_v37 = vpack.c.bf16 %v664_v47, %v664_v47  ;;  %v1046_v34 = vpack.c.bf16 %v672_v1, %v672_v1  ;;  %v1048_v3 = vpack.c.bf16 %v680_v52, %v680_v52  ;;  %v1130_v24 = vmax.bf16 %v2713_v46, %v1018_v54 }
  0x79   : > { %v1132_v5 = vmax.bf16 %v2713_v46, %v1020_v56  ;;  %v1134_v31 = vmax.bf16 %v2713_v46, %v1022_v57  ;;  %v1136_v9 = vmax.bf16 %v2713_v46, %v1024_v61  ;;  %v1138_v36 = vmax.bf16 %v2713_v46, %v1026_v62 }
  0x7a   : > { %v1140_v16 = vmax.bf16 %v2713_v46, %v1028_v0  ;;  %v1142_v43 = vmax.bf16 %v2713_v46, %v1030_v2  ;;  %v1144_v18 = vmax.bf16 %v2713_v46, %v1032_v6  ;;  %v1146_v28 = vmax.bf16 %v2713_v46, %v1034_v8 }
  0x7b   : > { %v1148_v23 = vmax.bf16 %v2713_v46, %v1036_v10  ;;  %v1150_v15 = vmax.bf16 %v2713_v46, %v1038_v42  ;;  %v1152_v51 = vmax.bf16 %v2713_v46, %v1040_v40  ;;  %v1154_v26 = vmax.bf16 %v2713_v46, %v1042_v32 }
  0x7c   : > { %v1156_v19 = vmax.bf16 %v2713_v46, %v1044_v37  ;;  %v1158_v21 = vmax.bf16 %v2713_v46, %v1046_v34  ;;  %v1160_v58 = vmax.bf16 %v2713_v46, %v1048_v3  ;;  %v1393_v25 = vunpack.c.l.b16 %v1130_v24 }
  0x7d   : > { %v1395_v30 = vunpack.c.l.b16 %v1132_v5  ;;  %v1397_v60 = vunpack.c.l.b16 %v1134_v31  ;;  %v1399_v33 = vunpack.c.l.b16 %v1136_v9  ;;  %v1401_v35 = vunpack.c.l.b16 %v1138_v36 }
  0x7e   : > { %v1403_v39 = vunpack.c.l.b16 %v1140_v16  ;;  %v1405_v63 = vunpack.c.l.b16 %v1142_v43  ;;  %v1407_v41 = vunpack.c.l.b16 %v1144_v18  ;;  %v1409_v44 = vunpack.c.l.b16 %v1146_v28 }
  0x7f   : > { %v1411_v47 = vunpack.c.l.b16 %v1148_v23  ;;  %v1413_v1 = vunpack.c.l.b16 %v1150_v15  ;;  %v1415_v48 = vunpack.c.l.b16 %v1152_v51  ;;  %v1417_v52 = vunpack.c.l.b16 %v1154_v26 }
  0x80   : > { %v1419_v54 = vunpack.c.l.b16 %v1156_v19  ;;  %v1421_v56 = vunpack.c.l.b16 %v1158_v21  ;;  %v1423_v57 = vunpack.c.l.b16 %v1160_v58  ;;  %v1549_v61 = vrot.slane %v1395_v30, 7 }
  0x81   : > { %v1551_v62 = vrot.slane %v1397_v60, 6  ;;  %v1553_v0 = vrot.slane %v1399_v33, 5  ;;  %v1555_v2 = vrot.slane %v1401_v35, 4  ;;  %v1557_v6 = vrot.slane %v1403_v39, 3 }
  0x82   : > { %v1559_v8 = vrot.slane %v1405_v63, 2  ;;  %v1550_v10 = vsel %vm1473_vm0, %v1549_v61, %v1393_v25  ;;  %v1561_v42 = vrot.slane %v1407_v41, 1  ;;  %v1577_v40 = vrot.slane %v1411_v47, 7 }
  0x83   : > { %v1579_v32 = vrot.slane %v1413_v1, 6  ;;  %v1552_v37 = vsel %vm1476_vm1, %v1551_v62, %v1550_v10  ;;  %v1581_v34 = vrot.slane %v1415_v48, 5  ;;  %v1583_v3 = vrot.slane %v1417_v52, 4 }
  0x84   : > { %v1585_v24 = vrot.slane %v1419_v54, 3  ;;  %v1554_v5 = vsel %vm1479_vm2, %v1553_v0, %v1552_v37  ;;  %v1578_v31 = vsel %vm1473_vm0, %v1577_v40, %v1409_v44  ;;  %v1587_v9 = vrot.slane %v1421_v56, 2 }
  0x85   : > { %v1589_v36 = vrot.slane %v1423_v57, 1  ;;  %v1556_v16 = vsel %vm1482_vm3, %v1555_v2, %v1554_v5  ;;  %v1580_v43 = vsel %vm1476_vm1, %v1579_v32, %v1578_v31  ;;  %v556_v18 = vrot.slane %v3164_v50, %v2880_v11 }
  0x86   : > { %v564_v28 = vrot.slane %v3167_v59, %v2880_v11  ;;  %v1558_v23 = vsel %vm1485_vm4, %v1557_v6, %v1556_v16  ;;  %v1582_v15 = vsel %vm1479_vm2, %v1581_v34, %v1580_v43  ;;  %v572_v51 = vrot.slane %v3170_v4, %v2880_v11 }
  0x87   : > { %v580_v26 = vrot.slane %v3174_v13, %v2880_v11  ;;  %v1560_v19 = vsel %vm1488_vm5, %v1559_v8, %v1558_v23  ;;  %v1584_v21 = vsel %vm1482_vm3, %v1583_v3, %v1582_v15  ;;  %v588_v50 = vrot.slane %v3178_v22, %v2880_v11 }
  0x88   : > { %v596_v59 = vrot.slane %v3183_v29, %v2880_v11  ;;  %v1562_v58 = vsel %vm1491_vm6, %v1561_v42, %v1560_v19  ;;  %v1586_v25 = vsel %vm1485_vm4, %v1585_v24, %v1584_v21  ;;  %v604_v4 = vrot.slane %v3186_v7, %v2880_v11 }
  0x89   : > { %v612_v13 = vrot.slane %v3193_v14, %v2880_v11  ;;  %v1588_v30 = vsel %vm1488_vm5, %v1587_v9, %v1586_v25  ;;  %v620_v60 = vrot.slane %v3196_v38, %v2880_v11  ;;  %v628_v22 = vrot.slane %v3205_v45, %v2880_v11 }
  0x8a   : > { %v636_v29 = vrot.slane %v3208_v20, %v2880_v11  ;;  %v1590_v33 = vsel %vm1491_vm6, %v1589_v36, %v1588_v30  ;;  %v644_v35 = vrot.slane %v3211_v49, %v2880_v11  ;;  %v652_v7 = vrot.slane %v3220_v53, %v2880_v11 }
  0x8b   : > { %v660_v14 = vrot.slane %v3223_v17, %v2880_v11  ;;  %v1678_v39 = vpack.c.b16 %v1590_v33, %v1562_v58  ;;  %v668_v38 = vrot.slane %v3226_v55, %v2880_v11  ;;  %v676_v45 = vrot.slane %v3235_v27, %v2880_v11 }
  0x8c   : > { %v1017_v63 = vpack.c.bf16 %v556_v18, %v556_v18  ;;  %v1019_v20 = vpack.c.bf16 %v564_v28, %v564_v28  ;;  %v1021_v41 = vpack.c.bf16 %v572_v51, %v572_v51  ;;  %v1023_v44 = vpack.c.bf16 %v580_v26, %v580_v26 }
  0x8d   : > { %v1025_v47 = vpack.c.bf16 %v588_v50, %v588_v50  ;;  %1827 = vmatprep.mubr.bf16.mxu0 %v1678_v39  ;;  %v1027_v49 = vpack.c.bf16 %v596_v59, %v596_v59  ;;  %v1029_v1 = vpack.c.bf16 %v604_v4, %v604_v4  ;;  %v1031_v48 = vpack.c.bf16 %v612_v13, %v612_v13  ;;  %v3340_v39 = vld [vmem:[%s2847_s14 + $0x42] sm:$0x3] }
  0x8e   : > { %v1033_v53 = vpack.c.bf16 %v620_v60, %v620_v60  ;;  %v1035_v52 = vpack.c.bf16 %v628_v22, %v628_v22  ;;  %v1037_v54 = vpack.c.bf16 %v636_v29, %v636_v29  ;;  %v1039_v17 = vpack.c.bf16 %v644_v35, %v644_v35  ;;  %v3336_v29 = vld [vmem:[%s2847_s14 + $0x40] sm:$0x3] }
  0x8f   : > { %v1041_v56 = vpack.c.bf16 %v652_v7, %v652_v7  ;;  %v1043_v57 = vpack.c.bf16 %v660_v14, %v660_v14  ;;  %v1045_v61 = vpack.c.bf16 %v668_v38, %v668_v38  ;;  %v1047_v55 = vpack.c.bf16 %v676_v45, %v676_v45 }
  0x90   : > { %v1129_v62 = vmax.bf16 %v2713_v46, %v1017_v63  ;;  %v1131_v27 = vmax.bf16 %v2713_v46, %v1019_v20  ;;  %v1133_v0 = vmax.bf16 %v2713_v46, %v1021_v41  ;;  %v1135_v2 = vmax.bf16 %v2713_v46, %v1023_v44  ;;  %v3344_v41 = vld [vmem:[%s2847_s14 + $0x44] sm:$0x3] }
  0x91   : > { %v1137_v6 = vmax.bf16 %v2713_v46, %v1025_v47  ;;  %v1139_v8 = vmax.bf16 %v2713_v46, %v1027_v49  ;;  %v1141_v10 = vmax.bf16 %v2713_v46, %v1029_v1  ;;  %v1143_v42 = vmax.bf16 %v2713_v46, %v1031_v48  ;;  %v3349_v48 = vld [vmem:[%s2847_s14 + $0x46] sm:$0x3] }
  0x92   : > { %v1145_v40 = vmax.bf16 %v2713_v46, %v1033_v53  ;;  %v1147_v32 = vmax.bf16 %v2713_v46, %v1035_v52  ;;  %v1149_v37 = vmax.bf16 %v2713_v46, %v1037_v54  ;;  %v1151_v34 = vmax.bf16 %v2713_v46, %v1039_v17  ;;  %v3352_v53 = vld [vmem:[%s2847_s14 + $0x48] sm:$0x3] }
  0x93   : > { %v1153_v3 = vmax.bf16 %v2713_v46, %v1041_v56  ;;  %v1155_v24 = vmax.bf16 %v2713_v46, %v1043_v57  ;;  %v1157_v5 = vmax.bf16 %v2713_v46, %v1045_v61  ;;  %v1159_v31 = vmax.bf16 %v2713_v46, %v1047_v55  ;;  %v3357_v56 = vld [vmem:[%s2847_s14 + $0x4a] sm:$0x3]  ;;  %v3360_v57 = vld [vmem:[%s2847_s14 + $0x4c] sm:$0x3] }
  0x94   : > { %v1392_v9 = vunpack.c.l.b16 %v1129_v62  ;;  %v1394_v36 = vunpack.c.l.b16 %v1131_v27  ;;  %v1396_v16 = vunpack.c.l.b16 %v1133_v0  ;;  %v1398_v43 = vunpack.c.l.b16 %v1135_v2  ;;  %v3367_v27 = vld [vmem:[%s2847_s14 + $0x4e] sm:$0x3]  ;;  %v3370_v0 = vld [vmem:[%s2847_s14 + $0x50] sm:$0x3]  ;;  %v3373_v2 = vld [vmem:[%s2847_s14 + $0x52] sm:$0x3] }
  0x95   : > { %v1400_v18 = vunpack.c.l.b16 %v1137_v6  ;;  %v1402_v28 = vunpack.c.l.b16 %v1139_v8  ;;  %v1404_v23 = vunpack.c.l.b16 %v1141_v10  ;;  %v1406_v15 = vunpack.c.l.b16 %v1143_v42 }
  0x96   : > { %v1408_v51 = vunpack.c.l.b16 %v1145_v40  ;;  %v1410_v26 = vunpack.c.l.b16 %v1147_v32  ;;  %v1412_v19 = vunpack.c.l.b16 %v1149_v37  ;;  %v1414_v21 = vunpack.c.l.b16 %v1151_v34  ;;  %v3382_v40 = vld [vmem:[%s2847_s14 + $0x54] sm:$0x3]  ;;  %v3385_v32 = vld [vmem:[%s2847_s14 + $0x56] sm:$0x3]  ;;  %v3388_v37 = vld [vmem:[%s2847_s14 + $0x58] sm:$0x3] }
  0x97   : > { %v1416_v50 = vunpack.c.l.b16 %v1153_v3  ;;  %v1418_v59 = vunpack.c.l.b16 %v1155_v24  ;;  %v1420_v58 = vunpack.c.l.b16 %v1157_v5  ;;  %v1422_v25 = vunpack.c.l.b16 %v1159_v31  ;;  %v3397_v31 = vld [vmem:[%s2847_s14 + $0x5a] sm:$0x3] }
  0x98   : > { %v1535_v4 = vrot.slane %v1394_v36, 7  ;;  %v1537_v13 = vrot.slane %v1396_v16, 6  ;;  %v1539_v30 = vrot.slane %v1398_v43, 5  ;;  %v1541_v60 = vrot.slane %v1400_v18, 4  ;;  %v3403_v36 = vld [vmem:[%s2847_s14 + $0x5e] sm:$0x3] }
  0x99   : > { %v1543_v22 = vrot.slane %v1402_v28, 3  ;;  %v1545_v35 = vrot.slane %v1404_v23, 2  ;;  %v1547_v7 = vrot.slane %v1406_v15, 1  ;;  %v1563_v14 = vrot.slane %v1410_v26, 7 }
  0x9a   : > { %v1536_v33 = vsel %vm1473_vm0, %v1535_v4, %v1392_v9  ;;  %v1565_v45 = vrot.slane %v1412_v19, 6  ;;  %v1567_v63 = vrot.slane %v1414_v21, 5  ;;  %v1569_v20 = vrot.slane %v1416_v50, 4  ;;  %v3400_v9 = vld [vmem:[%s2847_s14 + $0x5c] sm:$0x3] }
  0x9b   : > { %v1538_v38 = vsel %vm1476_vm1, %v1537_v13, %v1536_v33  ;;  %v1564_v47 = vsel %vm1473_vm0, %v1563_v14, %v1408_v51  ;;  %v1571_v49 = vrot.slane %v1418_v59, 3  ;;  %v1573_v1 = vrot.slane %v1420_v58, 2 }
  0x9c   : > { %v1540_v44 = vsel %vm1479_vm2, %v1539_v30, %v1538_v38  ;;  %v1566_v54 = vsel %vm1476_vm1, %v1565_v45, %v1564_v47  ;;  %v1575_v17 = vrot.slane %v1422_v25, 1  ;;  %v688_v61 = vrot.slane %v3336_v29, %v2882_v12 }
  0x9d   : > { %v1542_v52 = vsel %vm1482_vm3, %v1541_v60, %v1540_v44  ;;  %v1568_v62 = vsel %vm1479_vm2, %v1567_v63, %v1566_v54  ;;  %v696_v6 = vrot.slane %v3340_v39, %v2882_v12  ;;  %v704_v8 = vrot.slane %v3344_v41, %v2882_v12 }
  0x9e   : > { %v1544_v55 = vsel %vm1485_vm4, %v1543_v22, %v1542_v52  ;;  %v1570_v42 = vsel %vm1482_vm3, %v1569_v20, %v1568_v62  ;;  %v712_v34 = vrot.slane %v3349_v48, %v2882_v12  ;;  %v720_v3 = vrot.slane %v3352_v53, %v2882_v12 }
  0x9f   : > { %v1546_v10 = vsel %vm1488_vm5, %v1545_v35, %v1544_v55  ;;  %v1572_v5 = vsel %vm1485_vm4, %v1571_v49, %v1570_v42  ;;  %v728_v16 = vrot.slane %v3357_v56, %v2882_v12  ;;  %v736_v43 = vrot.slane %v3360_v57, %v2882_v12 }
  0xa0   : > { %v1548_v24 = vsel %vm1491_vm6, %v1547_v7, %v1546_v10  ;;  %v1574_v18 = vsel %vm1488_vm5, %v1573_v1, %v1572_v5  ;;  %v744_v28 = vrot.slane %v3367_v27, %v2882_v12  ;;  %v752_v23 = vrot.slane %v3370_v0, %v2882_v12 }
  0xa1   : > { %v760_v15 = vrot.slane %v3373_v2, %v2882_v12  ;;  %v1576_v51 = vsel %vm1491_vm6, %v1575_v17, %v1574_v18  ;;  %v768_v26 = vrot.slane %v3382_v40, %v2882_v12  ;;  %v776_v19 = vrot.slane %v3385_v32, %v2882_v12 }
  0xa2   : > { %v784_v21 = vrot.slane %v3388_v37, %v2882_v12  ;;  %v1677_v50 = vpack.c.b16 %v1576_v51, %v1548_v24  ;;  %v792_v59 = vrot.slane %v3397_v31, %v2882_v12  ;;  %v800_v58 = vrot.slane %v3400_v9, %v2882_v12 }
  0xa3   : > { %v808_v25 = vrot.slane %v3403_v36, %v2882_v12  ;;  %v1050_v4 = vpack.c.bf16 %v688_v61, %v688_v61  ;;  %v1052_v13 = vpack.c.bf16 %v696_v6, %v696_v6  ;;  %v1054_v30 = vpack.c.bf16 %v704_v8, %v704_v8 }
  0xa4   : > { %v1056_v60 = vpack.c.bf16 %v712_v34, %v712_v34  ;;  %1828 = vmatmul.mubr.bf16.gmra.mxu0 %v1677_v50  ;;  %v1058_v22 = vpack.c.bf16 %v720_v3, %v720_v3  ;;  %v1060_v33 = vpack.c.bf16 %v728_v16, %v728_v16  ;;  %v1062_v35 = vpack.c.bf16 %v736_v43, %v736_v43 }
  0xa5   : > { %v1064_v7 = vpack.c.bf16 %v744_v28, %v744_v28  ;;  %v1066_v14 = vpack.c.bf16 %v752_v23, %v752_v23  ;;  %v1068_v38 = vpack.c.bf16 %v760_v15, %v760_v15  ;;  %v1070_v45 = vpack.c.bf16 %v768_v26, %v768_v26 }
  0xa6   : > { %v1072_v63 = vpack.c.bf16 %v776_v19, %v776_v19  ;;  %v1074_v20 = vpack.c.bf16 %v784_v21, %v784_v21  ;;  %v1076_v44 = vpack.c.bf16 %v792_v59, %v792_v59  ;;  %v1078_v47 = vpack.c.bf16 %v800_v58, %v800_v58 }
  0xa7   : > { %v1080_v49 = vpack.c.bf16 %v808_v25, %v808_v25  ;;  %v1162_v1 = vmax.bf16 %v2713_v46, %v1050_v4  ;;  %v1164_v52 = vmax.bf16 %v2713_v46, %v1052_v13  ;;  %v1166_v54 = vmax.bf16 %v2713_v46, %v1054_v30 }
  0xa8   : > { %v1168_v17 = vmax.bf16 %v2713_v46, %v1056_v60  ;;  %v1170_v61 = vmax.bf16 %v2713_v46, %v1058_v22  ;;  %v1172_v55 = vmax.bf16 %v2713_v46, %v1060_v33  ;;  %v1174_v62 = vmax.bf16 %v2713_v46, %v1062_v35 }
  0xa9   : > { %v1176_v6 = vmax.bf16 %v2713_v46, %v1064_v7  ;;  %v1178_v8 = vmax.bf16 %v2713_v46, %v1066_v14  ;;  %v1180_v10 = vmax.bf16 %v2713_v46, %v1068_v38  ;;  %v1182_v42 = vmax.bf16 %v2713_v46, %v1070_v45 }
  0xaa   : > { %v1184_v34 = vmax.bf16 %v2713_v46, %v1072_v63  ;;  %v1186_v3 = vmax.bf16 %v2713_v46, %v1074_v20  ;;  %v1188_v24 = vmax.bf16 %v2713_v46, %v1076_v44  ;;  %v1190_v5 = vmax.bf16 %v2713_v46, %v1078_v47 }
  0xab   : > { %v1192_v16 = vmax.bf16 %v2713_v46, %v1080_v49  ;;  %v1425_v43 = vunpack.c.l.b16 %v1162_v1  ;;  %v1427_v18 = vunpack.c.l.b16 %v1164_v52  ;;  %v1429_v28 = vunpack.c.l.b16 %v1166_v54 }
  0xac   : > { %v1431_v23 = vunpack.c.l.b16 %v1168_v17  ;;  %v1433_v15 = vunpack.c.l.b16 %v1170_v61  ;;  %v1435_v51 = vunpack.c.l.b16 %v1172_v55  ;;  %v1437_v26 = vunpack.c.l.b16 %v1174_v62 }
  0xad   : > { %v1439_v19 = vunpack.c.l.b16 %v1176_v6  ;;  %v1441_v21 = vunpack.c.l.b16 %v1178_v8  ;;  %v1443_v50 = vunpack.c.l.b16 %v1180_v10  ;;  %v1445_v59 = vunpack.c.l.b16 %v1182_v42 }
  0xae   : > { %v1447_v58 = vunpack.c.l.b16 %v1184_v34  ;;  %v1449_v25 = vunpack.c.l.b16 %v1186_v3  ;;  %v1451_v4 = vunpack.c.l.b16 %v1188_v24  ;;  %v1453_v13 = vunpack.c.l.b16 %v1190_v5 }
  0xaf   : > { %v1455_v30 = vunpack.c.l.b16 %v1192_v16  ;;  %v1605_v60 = vrot.slane %v1427_v18, 7  ;;  %v1607_v22 = vrot.slane %v1429_v28, 6  ;;  %v1609_v33 = vrot.slane %v1431_v23, 5 }
  0xb0   : > { %v1611_v35 = vrot.slane %v1433_v15, 4  ;;  %v1613_v7 = vrot.slane %v1435_v51, 3  ;;  %v1615_v14 = vrot.slane %v1437_v26, 2  ;;  %v1617_v38 = vrot.slane %v1439_v19, 1 }
  0xb1   : > { %v1633_v45 = vrot.slane %v1443_v50, 7  ;;  %v1606_v63 = vsel %vm1473_vm0, %v1605_v60, %v1425_v43  ;;  %v1635_v20 = vrot.slane %v1445_v59, 6  ;;  %v1637_v44 = vrot.slane %v1447_v58, 5 }
  0xb2   : > { %v1639_v47 = vrot.slane %v1449_v25, 4  ;;  %v1608_v49 = vsel %vm1476_vm1, %v1607_v22, %v1606_v63  ;;  %v1641_v52 = vrot.slane %v1451_v4, 3  ;;  %v1643_v54 = vrot.slane %v1453_v13, 2 }
  0xb3   : > { %v1634_v1 = vsel %vm1473_vm0, %v1633_v45, %v1441_v21  ;;  %v1610_v17 = vsel %vm1479_vm2, %v1609_v33, %v1608_v49  ;;  %v1645_v55 = vrot.slane %v1455_v30, 1  ;;  %v684_v62 = vrot.slane %v3336_v29, %v2880_v11 }
  0xb4   : > { %v1636_v61 = vsel %vm1476_vm1, %v1635_v20, %v1634_v1  ;;  %v1612_v6 = vsel %vm1482_vm3, %v1611_v35, %v1610_v17  ;;  %v692_v10 = vrot.slane %v3340_v39, %v2880_v11  ;;  %v700_v42 = vrot.slane %v3344_v41, %v2880_v11 }
  0xb5   : > { %v1638_v8 = vsel %vm1479_vm2, %v1637_v44, %v1636_v61  ;;  %v1614_v34 = vsel %vm1485_vm4, %v1613_v7, %v1612_v6  ;;  %v708_v24 = vrot.slane %v3349_v48, %v2880_v11  ;;  %v716_v29 = vrot.slane %v3352_v53, %v2880_v11 }
  0xb6   : > { %v1640_v3 = vsel %vm1482_vm3, %v1639_v47, %v1638_v8  ;;  %v1616_v5 = vsel %vm1488_vm5, %v1615_v14, %v1614_v34  ;;  %v724_v39 = vrot.slane %v3357_v56, %v2880_v11  ;;  %v732_v41 = vrot.slane %v3360_v57, %v2880_v11 }
  0xb7   : > { %v1642_v16 = vsel %vm1485_vm4, %v1641_v52, %v1640_v3  ;;  %v1618_v43 = vsel %vm1491_vm6, %v1617_v38, %v1616_v5  ;;  %v740_v48 = vrot.slane %v3367_v27, %v2880_v11  ;;  %v748_v53 = vrot.slane %v3370_v0, %v2880_v11 }
  0xb8   : > { %v1644_v18 = vsel %vm1488_vm5, %v1643_v54, %v1642_v16  ;;  %v756_v23 = vrot.slane %v3373_v2, %v2880_v11  ;;  %v764_v56 = vrot.slane %v3382_v40, %v2880_v11  ;;  %v772_v57 = vrot.slane %v3385_v32, %v2880_v11 }
  0xb9   : > { %v1646_v28 = vsel %vm1491_vm6, %v1645_v55, %v1644_v18  ;;  %v780_v51 = vrot.slane %v3388_v37, %v2880_v11  ;;  %v788_v27 = vrot.slane %v3397_v31, %v2880_v11  ;;  %v796_v0 = vrot.slane %v3400_v9, %v2880_v11 }
  0xba   : > { %v1680_v15 = vpack.c.b16 %v1646_v28, %v1618_v43  ;;  %v804_v26 = vrot.slane %v3403_v36, %v2880_v11  ;;  %v1049_v2 = vpack.c.bf16 %v684_v62, %v684_v62  ;;  %v1051_v19 = vpack.c.bf16 %v692_v10, %v692_v10  ;;  %v3511_v28 = vld [vmem:[%s2847_s14 + $0x62] sm:$0x3] }
  0xbb   : > { %v1053_v21 = vpack.c.bf16 %v700_v42, %v700_v42  ;;  %v1055_v40 = vpack.c.bf16 %v708_v24, %v708_v24  ;;  %v1057_v50 = vpack.c.bf16 %v716_v29, %v716_v29  ;;  %v1059_v32 = vpack.c.bf16 %v724_v39, %v724_v39 }
  0xbc   : > { %1835 = vmatprep.mubr.bf16.mxu0 %v1680_v15  ;;  %v1061_v59 = vpack.c.bf16 %v732_v41, %v732_v41  ;;  %v1063_v58 = vpack.c.bf16 %v740_v48, %v740_v48  ;;  %v1065_v25 = vpack.c.bf16 %v748_v53, %v748_v53  ;;  %v1067_v37 = vpack.c.bf16 %v756_v23, %v756_v23  ;;  %v3508_v41 = vld [vmem:[%s2847_s14 + $0x60] sm:$0x3] }
  0xbd   : > { %v1069_v4 = vpack.c.bf16 %v764_v56, %v764_v56  ;;  %v1071_v13 = vpack.c.bf16 %v772_v57, %v772_v57  ;;  %v1073_v31 = vpack.c.bf16 %v780_v51, %v780_v51  ;;  %v1075_v30 = vpack.c.bf16 %v788_v27, %v788_v27  ;;  %v3514_v51 = vld [vmem:[%s2847_s14 + $0x64] sm:$0x3] }
  0xbe   : > { %v1077_v60 = vpack.c.bf16 %v796_v0, %v796_v0  ;;  %v1079_v9 = vpack.c.bf16 %v804_v26, %v804_v26  ;;  %v1161_v22 = vmax.bf16 %v2713_v46, %v1049_v2  ;;  %v1163_v36 = vmax.bf16 %v2713_v46, %v1051_v19  ;;  %v3518_v19 = vld [vmem:[%s2847_s14 + $0x66] sm:$0x3] }
  0xbf   : > { %v1165_v33 = vmax.bf16 %v2713_v46, %v1053_v21  ;;  %v1167_v35 = vmax.bf16 %v2713_v46, %v1055_v40  ;;  %v1169_v7 = vmax.bf16 %v2713_v46, %v1057_v50  ;;  %v1171_v14 = vmax.bf16 %v2713_v46, %v1059_v32 }
  0xc0   : > { %v1173_v38 = vmax.bf16 %v2713_v46, %v1061_v59  ;;  %v1175_v45 = vmax.bf16 %v2713_v46, %v1063_v58  ;;  %v1177_v63 = vmax.bf16 %v2713_v46, %v1065_v25  ;;  %v1179_v20 = vmax.bf16 %v2713_v46, %v1067_v37  ;;  %v3522_v59 = vld [vmem:[%s2847_s14 + $0x68] sm:$0x3] }
  0xc1   : > { %v1181_v44 = vmax.bf16 %v2713_v46, %v1069_v4  ;;  %v1183_v47 = vmax.bf16 %v2713_v46, %v1071_v13  ;;  %v1185_v49 = vmax.bf16 %v2713_v46, %v1073_v31  ;;  %v1187_v1 = vmax.bf16 %v2713_v46, %v1075_v30  ;;  %v3527_v4 = vld [vmem:[%s2847_s14 + $0x6a] sm:$0x3]  ;;  %v367_v13 = vld [vmem:[%s2847_s14 + $0x6c] sm:$0x3] }
  0xc2   : > { %v1189_v52 = vmax.bf16 %v2713_v46, %v1077_v60  ;;  %v1191_v54 = vmax.bf16 %v2713_v46, %v1079_v9  ;;  %v1424_v17 = vunpack.c.l.b16 %v1161_v22  ;;  %v1426_v61 = vunpack.c.l.b16 %v1163_v36  ;;  %v368_v9 = vld [vmem:[%s2847_s14 + $0x6e] sm:$0x3] }
  0xc3   : > { %v1428_v55 = vunpack.c.l.b16 %v1165_v33  ;;  %v1430_v62 = vunpack.c.l.b16 %v1167_v35  ;;  %v1432_v6 = vunpack.c.l.b16 %v1169_v7  ;;  %v1434_v8 = vunpack.c.l.b16 %v1171_v14 }
  0xc4   : > { %v1436_v10 = vunpack.c.l.b16 %v1173_v38  ;;  %v1438_v42 = vunpack.c.l.b16 %v1175_v45  ;;  %v1440_v34 = vunpack.c.l.b16 %v1177_v63  ;;  %v1442_v3 = vunpack.c.l.b16 %v1179_v20 }
  0xc5   : > { %v1444_v24 = vunpack.c.l.b16 %v1181_v44  ;;  %v1446_v29 = vunpack.c.l.b16 %v1183_v47  ;;  %v1448_v5 = vunpack.c.l.b16 %v1185_v49  ;;  %v1450_v16 = vunpack.c.l.b16 %v1187_v1 }
  0xc6   : > { %v1452_v39 = vunpack.c.l.b16 %v1189_v52  ;;  %v1454_v43 = vunpack.c.l.b16 %v1191_v54  ;;  %v1591_v18 = vrot.slane %v1426_v61, 7  ;;  %v1593_v48 = vrot.slane %v1428_v55, 6 }
  0xc7   : > { %v1595_v53 = vrot.slane %v1430_v62, 5  ;;  %v1597_v23 = vrot.slane %v1432_v6, 4  ;;  %v1599_v56 = vrot.slane %v1434_v8, 3  ;;  %v1601_v57 = vrot.slane %v1436_v10, 2 }
  0xc8   : > { %v1603_v15 = vrot.slane %v1438_v42, 1  ;;  %v1592_v27 = vsel %vm1473_vm0, %v1591_v18, %v1424_v17  ;;  %v1619_v0 = vrot.slane %v1442_v3, 7  ;;  %v1621_v26 = vrot.slane %v1444_v24, 6 }
  0xc9   : > { %v1623_v2 = vrot.slane %v1446_v29, 5  ;;  %v1594_v21 = vsel %vm1476_vm1, %v1593_v48, %v1592_v27  ;;  %v1625_v40 = vrot.slane %v1448_v5, 4  ;;  %v1627_v50 = vrot.slane %v1450_v16, 3 }
  0xca   : > { %v1629_v32 = vrot.slane %v1452_v39, 2  ;;  %v1596_v58 = vsel %vm1479_vm2, %v1595_v53, %v1594_v21  ;;  %v1620_v25 = vsel %vm1473_vm0, %v1619_v0, %v1440_v34  ;;  %v1631_v37 = vrot.slane %v1454_v43, 1 }
  0xcb   : > { %v816_v31 = vrot.slane %v3508_v41, %v2882_v12  ;;  %v1598_v30 = vsel %vm1482_vm3, %v1597_v23, %v1596_v58  ;;  %v1622_v60 = vsel %vm1476_vm1, %v1621_v26, %v1620_v25  ;;  %v824_v22 = vrot.slane %v3511_v28, %v2882_v12 }
  0xcc   : > { %v832_v36 = vrot.slane %v3514_v51, %v2882_v12  ;;  %v1600_v33 = vsel %vm1485_vm4, %v1599_v56, %v1598_v30  ;;  %v1624_v35 = vsel %vm1479_vm2, %v1623_v2, %v1622_v60  ;;  %v840_v7 = vrot.slane %v3518_v19, %v2882_v12 }
  0xcd   : > { %v848_v14 = vrot.slane %v3522_v59, %v2882_v12  ;;  %v1602_v38 = vsel %vm1488_vm5, %v1601_v57, %v1600_v33  ;;  %v1626_v45 = vsel %vm1482_vm3, %v1625_v40, %v1624_v35  ;;  %v856_v63 = vrot.slane %v3527_v4, %v2882_v12 }
  0xce   : > { %v864_v20 = vrot.slane %v367_v13, %v2882_v12  ;;  %v1604_v44 = vsel %vm1491_vm6, %v1603_v15, %v1602_v38  ;;  %v1628_v47 = vsel %vm1485_vm4, %v1627_v50, %v1626_v45  ;;  %v872_v49 = vrot.slane %v368_v9, %v2882_v12 }
  0xcf   : > { %v1082_v1 = vpack.c.bf16 %v816_v31, %v816_v31  ;;  %v1630_v52 = vsel %vm1488_vm5, %v1629_v32, %v1628_v47  ;;  %v1084_v54 = vpack.c.bf16 %v824_v22, %v824_v22  ;;  %v1086_v17 = vpack.c.bf16 %v832_v36, %v832_v36 }
  0xd0   : > { %v1088_v61 = vpack.c.bf16 %v840_v7, %v840_v7  ;;  %v1632_v55 = vsel %vm1491_vm6, %v1631_v37, %v1630_v52  ;;  %v1090_v62 = vpack.c.bf16 %v848_v14, %v848_v14  ;;  %v1092_v6 = vpack.c.bf16 %v856_v63, %v856_v63 }
  0xd1   : > { %v1094_v8 = vpack.c.bf16 %v864_v20, %v864_v20  ;;  %v1679_v10 = vpack.c.b16 %v1632_v55, %v1604_v44  ;;  %v1096_v42 = vpack.c.bf16 %v872_v49, %v872_v49  ;;  %v1194_v34 = vmax.bf16 %v2713_v46, %v1082_v1 }
  0xd2   : > { %v1196_v3 = vmax.bf16 %v2713_v46, %v1084_v54  ;;  %v1198_v24 = vmax.bf16 %v2713_v46, %v1086_v17  ;;  %v1200_v12 = vmax.bf16 %v2713_v46, %v1088_v61  ;;  %v1202_v29 = vmax.bf16 %v2713_v46, %v1090_v62 }
  0xd3   : > { %v1204_v5 = vmax.bf16 %v2713_v46, %v1092_v6  ;;  %1836 = vmatmul.mubr.bf16.gmra.mxu0 %v1679_v10  ;;  %v1206_v16 = vmax.bf16 %v2713_v46, %v1094_v8  ;;  %v1208_v39 = vmax.bf16 %v2713_v46, %v1096_v42  ;;  %v1457_v43 = vunpack.c.l.b16 %v1194_v34 }
  0xd4   : > { %v1459_v18 = vunpack.c.l.b16 %v1196_v3  ;;  %v1461_v48 = vunpack.c.l.b16 %v1198_v24  ;;  %v1463_v53 = vunpack.c.l.b16 %v1200_v12  ;;  %v1465_v23 = vunpack.c.l.b16 %v1202_v29 }
  0xd5   : > { %v1467_v56 = vunpack.c.l.b16 %v1204_v5  ;;  %v1469_v57 = vunpack.c.l.b16 %v1206_v16  ;;  %v1471_v15 = vunpack.c.l.b16 %v1208_v39  ;;  %v812_v0 = vrot.slane %v3508_v41, %v2880_v11 }
  0xd6   : > { %v1661_v27 = vrot.slane %v1459_v18, 7  ;;  %v1663_v26 = vrot.slane %v1461_v48, 6  ;;  %v1665_v2 = vrot.slane %v1463_v53, 5  ;;  %v1667_v21 = vrot.slane %v1465_v23, 4 }
  0xd7   : > { %v1669_v40 = vrot.slane %v1467_v56, 3  ;;  %v1671_v32 = vrot.slane %v1469_v57, 2  ;;  %v1673_v58 = vrot.slane %v1471_v15, 1  ;;  %v820_v25 = vrot.slane %v3511_v28, %v2880_v11  ;;  %v2577_v57 = vld [vmem:[%s3704_s3 + $0x8] sm:$0xff]   ;;  %v2578_v15 = vld [vmem:[%s3704_s3] sm:$0xff]  }
  0xd8   : > { %v1662_v50 = vsel %vm1473_vm0, %v1661_v27, %v1457_v43  ;;  %v828_v31 = vrot.slane %v3514_v51, %v2880_v11  ;;  %v836_v30 = vrot.slane %v3518_v19, %v2880_v11  ;;  %v844_v41 = vrot.slane %v3522_v59, %v2880_v11  ;;  %2435 = vmatprep.subr.bf16.mxu1 %v2577_v57 }
  0xd9   : > { %v1664_v37 = vsel %vm1476_vm1, %v1663_v26, %v1662_v50  ;;  %v852_v22 = vrot.slane %v3527_v4, %v2880_v11  ;;  %v860_v36 = vrot.slane %v367_v13, %v2880_v11  ;;  %v868_v28 = vrot.slane %v368_v9, %v2880_v11  ;;  %2436 = vmatpush3.bf16.msra.mxu1 %v2577_v57 }
  0xda   : > { %v1666_v60 = vsel %vm1479_vm2, %v1665_v2, %v1664_v37  ;;  %v1081_v35 = vpack.c.bf16 %v812_v0, %v812_v0  ;;  %v1083_v7 = vpack.c.bf16 %v820_v25, %v820_v25  ;;  %v1085_v51 = vpack.c.bf16 %v828_v31, %v828_v31  ;;  %2437 = vmatprep.subr.bf16.mxu1 %v2578_v15  ;;  %v2337_v2 = vld [vmem:[%s3703_s2] ss:$0 sm:$0xff] }
  0xdb   : > { %v1668_v33 = vsel %vm1482_vm3, %v1667_v21, %v1666_v60  ;;  %v1087_v19 = vpack.c.bf16 %v836_v30, %v836_v30  ;;  %v1089_v38 = vpack.c.bf16 %v844_v41, %v844_v41  ;;  %v1091_v45 = vpack.c.bf16 %v852_v22, %v852_v22 }
  0xdc   : > { %v1670_v14 = vsel %vm1485_vm4, %v1669_v40, %v1668_v33  ;;  %v1093_v63 = vpack.c.bf16 %v860_v36, %v860_v36  ;;  %v1095_v20 = vpack.c.bf16 %v868_v28, %v868_v28  ;;  %v1193_v4 = vmax.bf16 %v2713_v46, %v1081_v35 }
  0xdd   : > { %v1672_v59 = vsel %vm1488_vm5, %v1671_v32, %v1670_v14  ;;  %v1195_v11 = vmax.bf16 %v2713_v46, %v1083_v7  ;;  %v1197_v9 = vmax.bf16 %v2713_v46, %v1085_v51  ;;  %v1199_v44 = vmax.bf16 %v2713_v46, %v1087_v19  ;;  %2438 = vmatpush3.bf16.msra.mxu1 %v2578_v15 }
  0xde   : > { %v1674_v13 = vsel %vm1491_vm6, %v1673_v58, %v1672_v59  ;;  %v1201_v49 = vmax.bf16 %v2713_v46, %v1089_v38  ;;  %v1203_v1 = vmax.bf16 %v2713_v46, %v1091_v45  ;;  %v1205_v52 = vmax.bf16 %v2713_v46, %v1093_v63 }
  0xdf   : > { %v1682_v47 = vpack.c.b16 %v1674_v13, %v1674_v13  ;;  %v1207_v54 = vmax.bf16 %v2713_v46, %v1095_v20  ;;  %v1456_v17 = vunpack.c.l.b16 %v1193_v4  ;;  %v1458_v61 = vunpack.c.l.b16 %v1195_v11 }
  0xe0   : > { %v1460_v55 = vunpack.c.l.b16 %v1197_v9  ;;  %v1462_v62 = vunpack.c.l.b16 %v1199_v44  ;;  %v1464_v6 = vunpack.c.l.b16 %v1201_v49  ;;  %v1466_v8 = vunpack.c.l.b16 %v1203_v1 }
  0xe1   : > { %1843 = vmatprep.mubr.bf16.mxu0 %v1682_v47  ;;  %v1468_v10 = vunpack.c.l.b16 %v1205_v52  ;;  %v1470_v42 = vunpack.c.l.b16 %v1207_v54  ;;  %v1647_v34 = vrot.slane %v1458_v61, 7 }
  0xe2   : > { %v1649_v3 = vrot.slane %v1460_v55, 6  ;;  %v1651_v24 = vrot.slane %v1462_v62, 5  ;;  %v1653_v12 = vrot.slane %v1464_v6, 4  ;;  %v1655_v5 = vrot.slane %v1466_v8, 3  ;;  %v2579_v62 = vld [vmem:[%s3706_s5] sm:$0xff]  }
  0xe3   : > { %v1648_v29 = vsel %vm1473_vm0, %v1647_v34, %v1456_v17  ;;  %v1657_v39 = vrot.slane %v1468_v10, 2  ;;  %v1659_v43 = vrot.slane %v1470_v42, 1  ;;  %2447 = vmatprep.subr.bf16.mxu1 %v2579_v62  ;;  %v2354_v10 = vld [vmem:[%s3705_s4] ss:$0 sm:$0xff] }
  0xe4   : > { %v1650_v16 = vsel %vm1476_vm1, %v1649_v3, %v1648_v29 }
  0xe5   : > { %v1652_v46 = vsel %vm1479_vm2, %v1651_v24, %v1650_v16 }
  0xe6   : > { %v1654_v18 = vsel %vm1482_vm3, %v1653_v12, %v1652_v46 }
  0xe7   : > { %v1656_v48 = vsel %vm1485_vm4, %v1655_v5, %v1654_v18 }
  0xe8   : > { %v1658_v53 = vsel %vm1488_vm5, %v1657_v39, %v1656_v48 }
  0xe9   : > { %v1660_v23 = vsel %vm1491_vm6, %v1659_v43, %v1658_v53 }
  0xea   : > { %v1681_v56 = vpack.c.b16 %v1660_v23, %v1660_v23 }
  0xec   : > { %1844 = vmatmul.mubr.bf16.gmra.mxu0 %v1681_v56 }
 0x136   : > { %v2400_v27 = vpop.f32.mrf.mxu0 }
 0x138   : > { %v2401_v0 = vpop.f32.mrf.mxu0 }
 0x139   : > { %v2402_v26 = vadd.f32 %v2401_v0, %v2400_v27 }
 0x13a   : > { %v2403_v21 = vpop.f32.mrf.mxu0 }
 0x13b   : > { %v1822_v50 = vadd.f32 %v2402_v26, %v2337_v2 }
 0x13c   : > { %v2404_v40 = vpop.f32.mrf.mxu0 }
 0x13d   : > { %v2405_v32 = vadd.f32 %v2404_v40, %v2403_v21  ;;  %v1851_v25 = vmax.f32 %v1822_v50, 0.0  ;;  %v2361_v50 = vld [vmem:[%s3707_s6] ss:$0 sm:$0xff] }
 0x13f   : > { %v1825_v58 = vadd.f32 %v2405_v32, %v2337_v2 }
 0x141   : > { %v1852_v37 = vmax.f32 %v1825_v58, 0.0 }
 0x143   : > { %v1858_v31 = vpack.c.bf16 %v1852_v37, %v1851_v25 }
 0x145   : > { %2439 = vmatprep.mubr.msk.bf16.mxu1 %vm1885_vm7, %v1858_v31 }
 0x164   : > { %v2406_v30 = vpop.f32.mrf.mxu0 }
 0x166   : > { %v2407_v41 = vpop.f32.mrf.mxu0 }
 0x167   : > { %v2408_v60 = vadd.f32 %v2407_v41, %v2406_v30 }
 0x168   : > { %v2409_v22 = vpop.f32.mrf.mxu0 }
 0x169   : > { %v1830_v28 = vadd.f32 %v2408_v60, %v2337_v2 }
 0x16a   : > { %v2410_v36 = vpop.f32.mrf.mxu0 }
 0x16b   : > { %v2411_v33 = vadd.f32 %v2410_v36, %v2409_v22  ;;  %v1853_v7 = vmax.f32 %v1830_v28, 0.0 }
 0x16d   : > { %v1833_v35 = vadd.f32 %v2411_v33, %v2337_v2 }
 0x16f   : > { %v1854_v51 = vmax.f32 %v1833_v35, 0.0 }
 0x171   : > { %v1859_v14 = vpack.c.bf16 %v1854_v51, %v1853_v7 }
 0x173   : > { %2440 = vmatmul.mubr.msk.bf16.vlgmr.msra.gmra.mxu1 %vm1885_vm7, %v1859_v14 }
 0x174   : > { %2448 = vmatpush3.bf16.msra.mxu1 %v2579_v62 }
 0x193   : > { %v2412_v19 = vpop.f32.mrf.mxu0 }
 0x195   : > { %v2413_v38 = vpop.f32.mrf.mxu0 }
 0x196   : > { %v2414_v45 = vadd.f32 %v2413_v38, %v2412_v19 }
 0x197   : > { %v2415_v59 = vpop.f32.mrf.mxu0 }
 0x198   : > { %v1838_v20 = vadd.f32 %v2414_v45, %v2337_v2 }
 0x199   : > { %v2416_v63 = vpop.f32.mrf.mxu0 }
 0x19a   : > { %v2417_v4 = vadd.f32 %v2416_v63, %v2415_v59  ;;  %v1855_v11 = vmax.f32 %v1838_v20, 0.0 }
 0x19c   : > { %v1841_v13 = vadd.f32 %v2417_v4, %v2337_v2 }
 0x19e   : > { %v1856_v9 = vmax.f32 %v1841_v13, 0.0 }
 0x1a0   : > { %v1860_v44 = vpack.c.bf16 %v1856_v9, %v1855_v11 }
 0x1a2   : > { %2443 = vmatprep.mubr.msk.bf16.mxu1 %vm1885_vm7, %v1860_v44 }
 0x1ac   : > { %v2418_v47 = vpop.f32.mrf.mxu0 }
 0x1ae   : > { %v2419_v49 = vpop.f32.mrf.mxu0 }
 0x1af   : > { %v2420_v1 = vadd.f32 %v2419_v49, %v2418_v47 }
 0x1b0   : > { %v2421_v52 = vpop.f32.mrf.mxu0 }
 0x1b1   : > { %v1846_v54 = vadd.f32 %v2420_v1, %v2337_v2 }
 0x1b2   : > { %v2422_v17 = vpop.f32.mrf.mxu0 }
 0x1b3   : > { %v1857_v61 = vmax.f32 %v1846_v54, 0.0 }
 0x1b5   : > { %v1861_v55 = vpack.c.bf16 %v1857_v61, %v1857_v61 }
 0x1b7   : > { %2444 = vmatmul.mubr.msk.bf16.gmra.mxu1 %vm1885_vm7, %v1861_v55 }
 0x233   : > { %v2441_v6 = vpop.f32.mrf.mxu1 }
 0x234   : > { %v1941_v24 = vadd.f32 %v2441_v6, %v2354_v10 }
 0x235   : > { %v1932_v8 = vpop.f32.mrf.mxu1 }
 0x236   : > { %v1933_v34 = vadd.f32 %v2354_v10, %v1932_v8  ;;  %v1964_v46 = vmax.f32 %v1941_v24, 0.0 }
 0x237   : > { %v2442_v42 = vpop.f32.mrf.mxu1 }
 0x238   : > { %v1944_v3 = vadd.f32 %v2442_v42, %v2354_v10  ;;  %v1962_v16 = vmax.f32 %v1933_v34, 0.0 }
 0x239   : > { %v1935_v12 = vpop.f32.mrf.mxu1 }
 0x23a   : > { %v1936_v29 = vadd.f32 %v2354_v10, %v1935_v12  ;;  %v1965_v5 = vmax.f32 %v1944_v3, 0.0 }
 0x23c   : > { %v1963_v39 = vmax.f32 %v1936_v29, 0.0  ;;  %v1970_v18 = vpack.c.bf16 %v1965_v5, %v1964_v46 }
 0x23e   : > { %v1969_v43 = vpack.c.bf16 %v1963_v39, %v1962_v16 }
 0x240   : > { %2449 = vmatprep.mubr.msk.bf16.mxu1 %vm1988_vm8, %v1969_v43 }
 0x241   : > { %2450 = vmatmul.mubr.msk.bf16.vlgmr.msra.gmra.mxu1 %vm1988_vm8, %v1970_v18 }
 0x277   : > { %v2445_v48 = vpop.f32.mrf.mxu1 }
 0x278   : > { %v1957_v23 = vadd.f32 %v2445_v48, %v2354_v10 }
 0x279   : > { %v1948_v53 = vpop.f32.mrf.mxu1 }
 0x27a   : > { %v1949_v57 = vadd.f32 %v2354_v10, %v1948_v53  ;;  %v1968_v0 = vmax.f32 %v1957_v23, 0.0 }
 0x27b   : > { %v2446_v56 = vpop.f32.mrf.mxu1 }
 0x27c   : > { %v1966_v26 = vmax.f32 %v1949_v57, 0.0  ;;  %v1972_v40 = vpack.c.bf16 %v1968_v0, %v1968_v0 }
 0x27d   : > { %v1951_v15 = vpop.f32.mrf.mxu1 }
 0x27e   : > { %v1952_v27 = vadd.f32 %v2354_v10, %v1951_v15 }
 0x280   : > { %v1967_v2 = vmax.f32 %v1952_v27, 0.0 }
 0x282   : > { %v1971_v21 = vpack.c.bf16 %v1967_v2, %v1966_v26 }
 0x284   : > { %2453 = vmatprep.mubr.msk.bf16.mxu1 %vm1988_vm8, %v1971_v21 }
 0x285   : > { %2454 = vmatmul.mubr.msk.bf16.gmra.mxu1 %vm1988_vm8, %v1972_v40 }
 0x301   : > { %v2451_v32 = vpop.f32.mrf.mxu1 }
 0x302   : > { %v2044_v58 = vadd.f32 %v2451_v32, %v2361_v50 }
 0x303   : > { %v2035_v25 = vpop.f32.mrf.mxu1 }
 0x304   : > { %2068 = vst.msk [vmem:[%s3626_s13 + $0x10] sm:$0xff] %vm2065_vm9, %v2044_v58  ;;  %v2036_v37 = vadd.f32 %v2361_v50, %v2035_v25 }
 0x305   : > { %v2452_v31 = vpop.f32.mrf.mxu1 }
 0x306   : > { %2066 = vst.msk [vmem:[%s3626_s13] sm:$0xff] %vm2065_vm9, %v2036_v37  ;;  %v2047_v30 = vadd.f32 %v2452_v31, %v2361_v50 }
 0x307   : > { %v2038_v41 = vpop.f32.mrf.mxu1 }
 0x308   : > { %2069 = vst.msk [vmem:[%s3626_s13 + $0x18] sm:$0xff] %vm2065_vm9, %v2047_v30  ;;  %v2039_v60 = vadd.f32 %v2361_v50, %v2038_v41 }
 0x30a   : > { %2067 = vst.msk [vmem:[%s3626_s13 + $0x8] sm:$0xff] %vm2065_vm9, %v2039_v60 }
 0x345   : > { %v2455_v22 = vpop.f32.mrf.mxu1 }
 0x346   : > { %v2060_v36 = vadd.f32 %v2455_v22, %v2361_v50 }
 0x347   : > { %v2051_v28 = vpop.f32.mrf.mxu1 }
 0x348   : > { %2072 = vst.msk [vmem:[%s3626_s13 + $0x30] sm:$0xff] %vm2065_vm9, %v2060_v36  ;;  %v2052_v33 = vadd.f32 %v2361_v50, %v2051_v28 }
 0x349   : > { %v2456_v35 = vpop.f32.mrf.mxu1 }
 0x34a   : > { %2070 = vst.msk [vmem:[%s3626_s13 + $0x20] sm:$0xff] %vm2065_vm9, %v2052_v33  ;;  %2079 = sbr.rel (!%p2794_p8) target bundleno = 900 (0x384), region = 56 }
 0x34b   : > { %v2054_v7 = vpop.f32.mrf.mxu1 }
 0x34c   : > { %v2055_v51 = vadd.f32 %v2361_v50, %v2054_v7 }
 0x34e   : > { %2071 = vst.msk [vmem:[%s3626_s13 + $0x28] sm:$0xff] %vm2065_vm9, %v2055_v51 }
 0x34f   : > { %s3727_s18 = smov (!%p2082_p7, %s2081_s18), 7 }
 0x350   : > { %s2367_s24 = sshll.u32 %s3727_s18, 7 }
 0x351   : > { %p2370_p11 = scmp.eq.s32.totalorder %s2367_s24, 0 }
 0x352   : > { %2580 = sdivrem.u32 (!%p2370_p11), %s3727_s18, 7 }
 0x353   : > { %2090 = sbr.rel (%p2370_p11) target bundleno = 900 (0x384), region = 60 }
 0x35b   : > { %s3655_s11 = spop.drf %2580 }
 0x35c   : > { %p2371_p8 = scmp.le.s32.totalorder %s3655_s11, 0 }
 0x35d   : > { %s3717_s28 = smov (!%p2371_p8), %s3649_s21  ;;  %s3718_s15 = smov (!%p2371_p8), %s3626_s13 }
 0x35e   : > { %2279 = sbr.rel (%p2371_p8) target bundleno = 875 (0x36b), region = 142  ;;  %s3664_s17 = smov (!%p2371_p8), 0  }
 0x35f   : > { %s3666_s19 = smov (!%p2371_p8), 0  }
 0x363 LB: >> { %v2167_v14 = vld [vmem:[%s2684_s15] sm:$0xff]  ;;  %v2169_v19 = vld [vmem:[%s2684_s15 + $0x8] sm:$0xff]  ;;  %v2171_v38 = vld [vmem:[%s2684_s15 + $0x10] sm:$0xff]  ;;  %s2181_s10 = sadd.s32 1, %s2688_s17  ;;  %s2161_s19 = sadd.s32 1, %s2692_s19   ;;  %s2692_s19 = sphi %s3666_s19, %s2161_s19   ;;  %s2688_s17 = sphi %s3664_s17, %s3719_s17   ;;  %s2684_s15 = sphi %s3718_s15, %s2186_s15   ;;  %s2680_s28 = sphi %s3717_s28, %s2187_s28  }
 0x364   : >> { %2168 = vst [vmem:[%s2680_s28] sm:$0xff] %v2167_v14  ;;  %2170 = vst [vmem:[%s2680_s28 + $0x8] sm:$0xff] %v2169_v19  ;;  %v2173_v45 = vld [vmem:[%s2684_s15 + $0x18] sm:$0xff]  ;;  %v2175_v59 = vld [vmem:[%s2684_s15 + $0x20] sm:$0xff]  ;;  %p2182_p4 = scmp.ge.s32.totalorder %s2181_s10, %s3655_s11  ;;  %p2160_p5 = scmp.ge.s32.totalorder %s2161_s19, %s3655_s11 }
 0x365   : >> { %2172 = vst [vmem:[%s2680_s28 + $0x10] sm:$0xff] %v2171_v38  ;;  %v2177_v63 = vld [vmem:[%s2684_s15 + $0x28] sm:$0xff]  ;;  %2174 = vst [vmem:[%s2680_s28 + $0x18] sm:$0xff] %v2173_v45  ;;  %v2179_v20 = vld [vmem:[%s2684_s15 + $0x30] sm:$0xff] }
 0x366   : >> { %2176 = vst [vmem:[%s2680_s28 + $0x20] sm:$0xff] %v2175_v59  ;;  %2178 = vst [vmem:[%s2680_s28 + $0x28] sm:$0xff] %v2177_v63  ;;  %s3729_s10 = smov (%p2182_p4, %s2181_s10), 0  ;;  %2163 = sbr.rel (!%p2160_p5) target bundleno = 867 (0x363), region = 148 }
 0x367   : >> { %2180 = vst [vmem:[%s2680_s28 + $0x30] sm:$0xff] %v2179_v20  ;;  %s2184_s20 = smul.u32 56, %s3729_s10  ;;  %s3719_s17 = smov %s3729_s10 }
 0x369   : >> { %s2186_s15 = scalar_lea.vmem %s3626_s13, %s2184_s20 [#allocation4]   ;;  %s2187_s28 = scalar_lea.vmem %s3649_s21, %s2184_s20  }
 0x36b PF: > { %2582 = sdivrem.u32 %s3727_s18, 7 }
 0x36c   : > { %s2372_s22 = smul.u32 56, %s3655_s11 }
 0x36e   : > { %s2192_s23 = scalar_lea.vmem %s3626_s13, %s2372_s22 [#allocation4]   ;;  %s2194_s30 = scalar_lea.vmem %s3649_s21, %s2372_s22  }
 0x374   : > { %s2583_s12 = spop.drf %2582 }
 0x375   : > { %p2374_p6 = scmp.le.s32.totalorder %s2583_s12, 0 }
 0x376   : > { %s2694_s8 = smov (!%p2374_p6), %s2194_s30   ;;  %s2698_s16 = smov (!%p2374_p6), %s2192_s23  }
 0x377   : > { %2293 = sbr.rel (%p2374_p6) target bundleno = 900 (0x384), region = 153  ;;  %s2702_s14 = smov (!%p2374_p6), 0  }
 0x378   : > { %s2706_s27 = smov (!%p2374_p6), 0  }
 0x37c LB: >> { %v2204_v4 = vld [vmem:[%s2700_s16] sm:$0xff]  ;;  %s2206_s24 = sadd.s32 1, %s2704_s14  ;;  %s2198_s27 = sadd.s32 1, %s2708_s27   ;;  %s2708_s27 = sphi %s2706_s27, %s2198_s27   ;;  %s2704_s14 = sphi %s2702_s14, %s2703_s14   ;;  %s2700_s16 = sphi %s2698_s16, %s2211_s16   ;;  %s2696_s8 = sphi %s2694_s8, %s2212_s8  }
 0x37d   : >> { %2205 = vst [vmem:[%s2696_s8] sm:$0xff] %v2204_v4  ;;  %p2207_p9 = scmp.ge.s32.totalorder %s2206_s24, %s2583_s12  ;;  %p2197_p10 = scmp.ge.s32.totalorder %s2198_s27, %s2583_s12 }
 0x37f   : >> { %s3731_s24 = smov (%p2207_p9, %s2206_s24), 0  ;;  %2200 = sbr.rel (!%p2197_p10) target bundleno = 892 (0x37c), region = 159 }
 0x380   : >> { %s2375_s13 = sshll.u32 %s3731_s24, 3  ;;  %s2703_s14 = smov %s3731_s24  }
 0x381   : >> { %s2211_s16 = scalar_lea.vmem %s2192_s23, %s2375_s13 [#allocation4]   ;;  %s2212_s8 = scalar_lea.vmem %s2194_s30, %s2375_s13  }
 0x384 PF: > { %p17_p12 = scmp.ge.s32.totalorder %s2776_s29, 4   ;;  %s3720_s24 = smov %s2668_s25 }
 0x385   : > { %s3721_s25 = smov %s2672_s26  ;;  %s3722_s26 = smov %s2786_s9 }
 0x386   : > { %s3723_s27 = smov %s2776_s29  ;;  %19 = sbr.rel (!%p17_p12) target bundleno = 3 (0x3), region = 170 }
 0x38b   :  { %2228 = vsyncpa [#allocation3], 1 }
 0x38c   :  { %2230 = vsyncpa [#allocation3 + $0x1], 1 }

</bundles_post_ra>
